<compile_context>
chip_gen: v7x
topology: tpu7x:2x2x1
jax: 0.10.0
libtpu: 0.0.40
codegen_flags: <defaults>
</compile_context>

<pallas_src>
import functools

import jax
import jax.numpy as jnp
from jax import lax
from jax.experimental import pallas as pl
from jax.experimental.pallas import tpu as pltpu

LANE = 128


def _lstm_cell(gates, c, Hd):
    # gates: (rows, 4*Hd) with column blocks [i | f | o | g]
    sg = jax.nn.sigmoid(gates[:, :3 * Hd])          # one EUP pass for i, f, o
    i = sg[:, 0:Hd]
    f = sg[:, Hd:2 * Hd]
    o = sg[:, 2 * Hd:3 * Hd]
    g = jnp.tanh(gates[:, 3 * Hd:])                 # one EUP pass for g
    c = f * c + i * g
    h = o * jnp.tanh(c)
    return h, c


def lstm_tagger_kernel(cx_ref, wxw_ref, cwhh_ref, fwihc_ref, fwhh_ref,
                       wt_ref, bt_ref, out_ref, *, seq_len, block_b):
    """One grid step = one block of `block_b` sentences.

    cx_ref:    (1, L*N, 4*H2)  pre-projected char inputs (+bias); N = T*Bb,
               rows ordered (char step l, word t, sentence b).
    wxw_ref:   (1, N, 4*H)     pre-projected word inputs (+bias), rows (t, b).
    cwhh_ref:  (H2, 4*H2)      fused char-LSTM recurrent weights.
    fwihc_ref: (H2, 4*H)       word-LSTM input weights for the h_char features.
    fwhh_ref:  (H, 4*H)        fused word-LSTM recurrent weights.
    wt_ref:    (H, 128)        lane-padded tag head; bt_ref: (1, 128).
    out_ref:   (1, N, 128)     log-softmax scores, rows (t, b), lane-padded.
    """
    T, Bb = seq_len, block_b
    N = wxw_ref.shape[1]
    L = cx_ref.shape[1] // N
    H2 = cwhh_ref.shape[0]
    H = fwhh_ref.shape[0]

    # ---- char-level LSTM: all (word, sentence) pairs batched over char time --
    cx = cx_ref[0]                                   # (L*N, 4*H2)
    cwhh = cwhh_ref[...]                             # hoisted
    h = jnp.zeros((N, H2), jnp.float32)
    c = jnp.zeros((N, H2), jnp.float32)
    for l in range(L):                               # unrolled (L static)
        gates = cx[l * N:(l + 1) * N] + jnp.dot(
            h, cwhh, preferred_element_type=jnp.float32)
        h, c = _lstm_cell(gates, c, H2)
    h_char = h                                       # (N, H2), rows (t, b)

    # ---- word-level LSTM over the sentence, batched over Bb sentences --------
    # word-embedding contribution already folded into wxw via the host gather.
    wx = wxw_ref[0] + jnp.dot(h_char, fwihc_ref[...],
                              preferred_element_type=jnp.float32)   # (N, 4*H)
    fwhh = fwhh_ref[...]                             # hoisted
    hw = jnp.zeros((Bb, H), jnp.float32)
    cw = jnp.zeros((Bb, H), jnp.float32)
    hs = []
    for t in range(T):                               # unrolled (T static)
        gates = wx[t * Bb:(t + 1) * Bb] + jnp.dot(
            hw, fwhh, preferred_element_type=jnp.float32)
        hw, cw = _lstm_cell(gates, cw, H)
        hs.append(hw)
    lstm_out = jnp.concatenate(hs, axis=0)           # (N, H), rows (t, b)

    # ---- linear head (lane-padded to 128) + log_softmax(dim=1) ---------------
    # Padded columns carry bias -1e9 -> exp() underflows to 0, so the softmax
    # normalization only sees the real tagset columns.
    tag = (jnp.dot(lstm_out, wt_ref[...], preferred_element_type=jnp.float32)
           + bt_ref[...])                            # (N, 128)
    m = jnp.max(tag, axis=1, keepdims=True)
    z = tag - m
    out_ref[0] = z - jnp.log(jnp.sum(jnp.exp(z), axis=1, keepdims=True))


# ----------------------------- host-side glue -------------------------------

def _fuse_lstm_params(w_ih, w_hh, b_ih, b_hh, hidden):
    """PyTorch (4H,in)/(4H,H)/(4H,) -> fused (in,4H)/(H,4H)/(1,4H);
    gates reordered i,f,g,o -> i,f,o,g so sigmoid/tanh slices are contiguous."""
    order = (0, 1, 3, 2)

    def fuse_w(w):
        in_dim = w.shape[1]
        w = w.reshape(4, hidden, in_dim)
        w = jnp.stack([w[k] for k in order], axis=0)        # (4, H, in)
        return jnp.transpose(w, (2, 0, 1)).reshape(in_dim, 4 * hidden)

    b = (b_ih + b_hh).reshape(4, hidden)
    b = jnp.stack([b[k] for k in order], axis=0).reshape(1, 4 * hidden)
    return fuse_w(w_ih), fuse_w(w_hh), b


def _pad_head(w, b, lane=LANE):
    """(tagset, H) / (tagset,) -> (H, lane) / (1, lane) with -1e9 bias padding."""
    tagset, H = w.shape
    wt = jnp.zeros((H, lane), jnp.float32).at[:, :tagset].set(w.T)
    bt = jnp.full((1, lane), -1e9, jnp.float32).at[:, :tagset].set(b)
    return wt, bt


def _prepare(params):
    """Fuse gate weights and pre-project the embedding tables (host side)."""
    Ew = params["emb_word"].shape[1]
    H2 = params["char_lstm_raw"][1].shape[1]
    H = params["final_lstm_raw"][1].shape[1]
    cwih, cwhh, cb = _fuse_lstm_params(*params["char_lstm_raw"], H2)
    fwih, fwhh, fb = _fuse_lstm_params(*params["final_lstm_raw"], H)
    char_table = params["emb_char"] @ cwih + cb            # (char_size, 4*H2)
    word_table = params["emb_word"] @ fwih[:Ew] + fb       # (vocab, 4*H)
    fwih_char = fwih[Ew:]                                   # (H2, 4*H)
    wt, bt = _pad_head(*params["head"])
    return dict(char_table=char_table, word_table=word_table, cwhh=cwhh,
                fwih_char=fwih_char, fwhh=fwhh, wt=wt, bt=bt,
                H=H, H2=H2, tagset=params["head"][0].shape[0])


def lstm_tagger2_forward_batched(sentences, seq_chars, params, *, block_b=8):
    """sentences: (B, T) int32, seq_chars: (B, T, L) int32 -> (B, T, tagset)."""
    B, T = sentences.shape
    L = seq_chars.shape[2]
    if B < block_b:
        block_b = B
    assert B % block_b == 0, "batch must be a multiple of block_b"
    nblk = B // block_b
    N = T * block_b

    p = _prepare(params)
    H, H2, tagset = p["H"], p["H2"], p["tagset"]

    # Transpose the cheap int32 index arrays (not the float activations) so the
    # gathers deliver rows in the order the kernel wants.
    idx_char = seq_chars.reshape(nblk, block_b, T, L)
    idx_char = jnp.transpose(idx_char, (0, 3, 2, 1)).reshape(nblk, L * N)
    idx_word = jnp.transpose(sentences.reshape(nblk, block_b, T),
                             (0, 2, 1)).reshape(nblk, N)
    cx = jnp.take(p["char_table"], idx_char, axis=0)        # (nblk, L*N, 4*H2)
    wxw = jnp.take(p["word_table"], idx_word, axis=0)       # (nblk, N, 4*H)

    kernel = functools.partial(lstm_tagger_kernel, seq_len=T, block_b=block_b)
    out = pl.pallas_call(
        kernel,
        out_shape=jax.ShapeDtypeStruct((nblk, N, LANE), jnp.float32),
        grid=(nblk,),
        in_specs=[
            pl.BlockSpec((1, L * N, 4 * H2), lambda b: (b, 0, 0)),
            pl.BlockSpec((1, N, 4 * H), lambda b: (b, 0, 0)),
            # weights: constant block index -> resident across grid steps
            pl.BlockSpec((H2, 4 * H2), lambda b: (0, 0)),
            pl.BlockSpec((H2, 4 * H), lambda b: (0, 0)),
            pl.BlockSpec((H, 4 * H), lambda b: (0, 0)),
            pl.BlockSpec((H, LANE), lambda b: (0, 0)),
            pl.BlockSpec((1, LANE), lambda b: (0, 0)),
        ],
        out_specs=pl.BlockSpec((1, N, LANE), lambda b: (b, 0, 0)),
        compiler_params=pltpu.CompilerParams(
            dimension_semantics=("parallel",)),
    )(cx, wxw, p["cwhh"], p["fwih_char"], p["fwhh"], p["wt"], p["bt"])

    # rows are (word t, sentence b) within each block -> (B, T, tagset)
    out = out.reshape(nblk, T, block_b, LANE)
    out = jnp.transpose(out, (0, 2, 1, 3)).reshape(B, T, LANE)
    return out[:, :, :tagset]


def lstm_tagger2_forward(sentence, seq_chars, params):
    """Module-equivalent single-sentence forward.
    sentence: (T,) int32, seq_chars: (T, L) int32 -> (T, tagset) log-probs."""
    out = lstm_tagger2_forward_batched(sentence[None], seq_chars[None],
                                       params, block_b=1)
    return out[0]


# ----------------------------- pure-JAX reference ---------------------------

def _split_lstm_params(w_ih, w_hh, b_ih, b_hh, hidden):
    """PyTorch layout (4H, in)/(4H, H)/(4H,) -> per-gate, transposed."""
    w_ih = w_ih.reshape(4, hidden, -1).transpose(0, 2, 1)    # (4, in, H)
    w_hh = w_hh.reshape(4, hidden, -1).transpose(0, 2, 1)    # (4, H,  H)
    b = (b_ih + b_hh).reshape(4, 1, hidden)                  # (4, 1,  H)
    return w_ih, w_hh, b


def _ref_lstm(xs, wih, whh, b, hidden):
    def step(carry, x):
        h, c = carry

        def g(k):
            return x @ wih[k] + h @ whh[k] + b[k]

        i = jax.nn.sigmoid(g(0)); f = jax.nn.sigmoid(g(1))
        gg = jnp.tanh(g(2)); o = jax.nn.sigmoid(g(3))
        c = f * c + i * gg
        h = o * jnp.tanh(c)
        return (h, c), h

    B = xs.shape[1]
    z = jnp.zeros((B, hidden), jnp.float32)
    (hT, _), hs = lax.scan(step, (z, z), xs)
    return hs, hT


def reference_forward(sentence, seq_chars, params):
    we = jnp.take(params["emb_word"], sentence, axis=0)
    ce = jnp.take(params["emb_char"], seq_chars, axis=0)
    ce = jnp.transpose(ce, (1, 0, 2))                        # (L, T, Ec)
    H2 = params["char_lstm_raw"][1].shape[1]
    H = params["final_lstm_raw"][1].shape[1]
    cwih, cwhh, cb = _split_lstm_params(*params["char_lstm_raw"], H2)
    fwih, fwhh, fb = _split_lstm_params(*params["final_lstm_raw"], H)
    w_head, b_head = params["head"]                          # (tagset, H), (tagset,)
    _, h_char = _ref_lstm(ce, cwih, cwhh, cb, H2)            # (T, H2)
    x = jnp.concatenate([we, h_char], axis=1)[:, None, :]    # (T, 1, Ew+H2)
    hs, _ = _ref_lstm(x, fwih, fwhh, fb, H)                  # (T, 1, H)
    tag = hs[:, 0, :] @ w_head.T + b_head
    return jax.nn.log_softmax(tag, axis=1)


if __name__ == "__main__":
    vocab_size, char_size = 50, 30
    Ew, Ec, H, H2, tagset = 16, 8, 32, 16, 8
    T, L = 8, 6

    key = jax.random.PRNGKey(0)
    ks = jax.random.split(key, 16)

    def u(k, shape, scale):
        return jax.random.uniform(k, shape, jnp.float32, -scale, scale)

    s2, sH = 1.0 / jnp.sqrt(H2), 1.0 / jnp.sqrt(H)
    params = {
        "emb_word": jax.random.normal(ks[0], (vocab_size, Ew), jnp.float32),
        "emb_char": jax.random.normal(ks[1], (char_size, Ec), jnp.float32),
        "char_lstm_raw": (u(ks[2], (4 * H2, Ec), s2), u(ks[3], (4 * H2, H2), s2),
                          u(ks[4], (4 * H2,), s2), u(ks[5], (4 * H2,), s2)),
        "final_lstm_raw": (u(ks[6], (4 * H, Ew + H2), sH), u(ks[7], (4 * H, H), sH),
                           u(ks[8], (4 * H,), sH), u(ks[9], (4 * H,), sH)),
        "head": (u(ks[10], (tagset, H), sH), u(ks[11], (tagset,), sH)),
    }

    # --- single-sentence forward (module semantics) --------------------------
    sentence = jax.random.randint(ks[12], (T,), 0, vocab_size, dtype=jnp.int32)
    seq_chars = jax.random.randint(ks[13], (T, L), 0, char_size, dtype=jnp.int32)
    tag_scores = jax.block_until_ready(
        lstm_tagger2_forward(sentence, seq_chars, params))
    ref = reference_forward(sentence, seq_chars, params)
    assert tag_scores.shape == (T, tagset)
    assert jnp.allclose(tag_scores, ref, rtol=1e-3, atol=1e-3)

    # --- batched forward (perf path: 2 blocks of 8 sentences, "parallel" grid) -
    B = 16
    sentences = jax.random.randint(ks[14], (B, T), 0, vocab_size, dtype=jnp.int32)
    seq_chars_b = jax.random.randint(ks[15], (B, T, L), 0, char_size,
                                     dtype=jnp.int32)
    tag_scores_b = jax.block_until_ready(
        lstm_tagger2_forward_batched(sentences, seq_chars_b, params, block_b=8))
    ref_b = jax.vmap(lambda s, c: reference_forward(s, c, params))(
        sentences, seq_chars_b)
    assert tag_scores_b.shape == (B, T, tagset)
    assert jnp.allclose(tag_scores_b, ref_b, rtol=1e-3, atol=1e-3)

    print("KERNEL_OK")
</pallas_src>

<mosaic_0001>
module attributes {stable_mosaic.version = 11 : i64} {
  func.func @lstm_tagger_kernel(%arg0: i32, %arg1: memref<1x48x64xf32, #tpu.memory_space<vmem>>, %arg2: memref<1x8x128xf32, #tpu.memory_space<vmem>>, %arg3: memref<16x64xf32, #tpu.memory_space<vmem>>, %arg4: memref<16x128xf32, #tpu.memory_space<vmem>>, %arg5: memref<32x128xf32, #tpu.memory_space<vmem>>, %arg6: memref<32x128xf32, #tpu.memory_space<vmem>>, %arg7: memref<1x128xf32, #tpu.memory_space<vmem>>, %arg8: memref<1x8x128xf32, #tpu.memory_space<vmem>>) attributes {dimension_semantics = [#tpu.dimension_semantics<parallel>], iteration_bounds = array<i64: 1>, scalar_prefetch = 0 : i64, scratch_operands = 0 : i64, tpu.core_type = #tpu.core_type<tc>, window_params = [{transform_indices = @transform_0, window_bounds = array<i64: 1, 48, 64>}, {transform_indices = @transform_1, window_bounds = array<i64: 1, 8, 128>}, {pipeline_mode = #tpu.pipeline_mode<synchronous>, transform_indices = @transform_2, window_bounds = array<i64: 16, 64>}, {pipeline_mode = #tpu.pipeline_mode<synchronous>, transform_indices = @transform_3, window_bounds = array<i64: 16, 128>}, {pipeline_mode = #tpu.pipeline_mode<synchronous>, transform_indices = @transform_4, window_bounds = array<i64: 32, 128>}, {pipeline_mode = #tpu.pipeline_mode<synchronous>, transform_indices = @transform_5, window_bounds = array<i64: 32, 128>}, {pipeline_mode = #tpu.pipeline_mode<synchronous>, transform_indices = @transform_6, window_bounds = array<i64: 1, 128>}, {transform_indices = @transform_7, window_bounds = array<i64: 1, 8, 128>}]} {
    %c0 = arith.constant 0 : index
    %c0_0 = arith.constant 0 : index
    %c0_1 = arith.constant 0 : index
    %0 = vector.load %arg1[%c0, %c0_0, %c0_1] : memref<1x48x64xf32, #tpu.memory_space<vmem>>, vector<1x48x64xf32>
    %1 = vector.shape_cast %0 : vector<1x48x64xf32> to vector<48x64xf32>
    %c0_2 = arith.constant 0 : index
    %c0_3 = arith.constant 0 : index
    %2 = vector.load %arg3[%c0_2, %c0_3] : memref<16x64xf32, #tpu.memory_space<vmem>>, vector<16x64xf32>
    %cst = arith.constant 0.000000e+00 : f32
    %3 = vector.broadcast %cst : f32 to vector<8x16xf32>
    %cst_4 = arith.constant 0.000000e+00 : f32
    %4 = vector.broadcast %cst_4 : f32 to vector<8x16xf32>
    %5 = vector.extract_strided_slice %1 {offsets = [0, 0], sizes = [8, 64], strides = [1, 1]} : vector<48x64xf32> to vector<8x64xf32>
    %cst_5 = arith.constant dense<0.000000e+00> : vector<8x64xf32>
    %6 = tpu.matmul %3, %2, %cst_5 {dimension_numbers = #tpu.dot_dimension_numbers<[1], [0], [0], [1], [0, 0, 1, 1], [], []>} : vector<8x16xf32>, vector<16x64xf32>, vector<8x64xf32> -> vector<8x64xf32>
    %7 = arith.addf %5, %6 : vector<8x64xf32>
    %8 = vector.extract_strided_slice %7 {offsets = [0, 0], sizes = [8, 48], strides = [1, 1]} : vector<8x64xf32> to vector<8x48xf32>
    %9 = arith.negf %8 : vector<8x48xf32>
    %10 = math.exp %9 : vector<8x48xf32>
    %cst_6 = arith.constant 1.000000e+00 : f32
    %11 = vector.broadcast %cst_6 : f32 to vector<8x48xf32>
    %12 = arith.addf %11, %10 : vector<8x48xf32>
    %13 = arith.divf %11, %12 : vector<8x48xf32>
    %14 = vector.extract_strided_slice %13 {offsets = [0, 0], sizes = [8, 16], strides = [1, 1]} : vector<8x48xf32> to vector<8x16xf32>
    %15 = vector.extract_strided_slice %13 {offsets = [0, 16], sizes = [8, 16], strides = [1, 1]} : vector<8x48xf32> to vector<8x16xf32>
    %16 = vector.extract_strided_slice %13 {offsets = [0, 32], sizes = [8, 16], strides = [1, 1]} : vector<8x48xf32> to vector<8x16xf32>
    %17 = vector.extract_strided_slice %7 {offsets = [0, 48], sizes = [8, 16], strides = [1, 1]} : vector<8x64xf32> to vector<8x16xf32>
    %18 = math.tanh %17 : vector<8x16xf32>
    %19 = arith.mulf %15, %4 : vector<8x16xf32>
    %20 = arith.mulf %14, %18 : vector<8x16xf32>
    %21 = arith.addf %19, %20 : vector<8x16xf32>
    %22 = math.tanh %21 : vector<8x16xf32>
    %23 = arith.mulf %16, %22 : vector<8x16xf32>
    %24 = vector.extract_strided_slice %1 {offsets = [8, 0], sizes = [8, 64], strides = [1, 1]} : vector<48x64xf32> to vector<8x64xf32>
    %cst_7 = arith.constant dense<0.000000e+00> : vector<8x64xf32>
    %25 = tpu.matmul %23, %2, %cst_7 {dimension_numbers = #tpu.dot_dimension_numbers<[1], [0], [0], [1], [0, 0, 1, 1], [], []>} : vector<8x16xf32>, vector<16x64xf32>, vector<8x64xf32> -> vector<8x64xf32>
    %26 = arith.addf %24, %25 : vector<8x64xf32>
    %27 = vector.extract_strided_slice %26 {offsets = [0, 0], sizes = [8, 48], strides = [1, 1]} : vector<8x64xf32> to vector<8x48xf32>
    %28 = arith.negf %27 : vector<8x48xf32>
    %29 = math.exp %28 : vector<8x48xf32>
    %cst_8 = arith.constant 1.000000e+00 : f32
    %30 = vector.broadcast %cst_8 : f32 to vector<8x48xf32>
    %31 = arith.addf %30, %29 : vector<8x48xf32>
    %32 = arith.divf %30, %31 : vector<8x48xf32>
    %33 = vector.extract_strided_slice %32 {offsets = [0, 0], sizes = [8, 16], strides = [1, 1]} : vector<8x48xf32> to vector<8x16xf32>
    %34 = vector.extract_strided_slice %32 {offsets = [0, 16], sizes = [8, 16], strides = [1, 1]} : vector<8x48xf32> to vector<8x16xf32>
    %35 = vector.extract_strided_slice %32 {offsets = [0, 32], sizes = [8, 16], strides = [1, 1]} : vector<8x48xf32> to vector<8x16xf32>
    %36 = vector.extract_strided_slice %26 {offsets = [0, 48], sizes = [8, 16], strides = [1, 1]} : vector<8x64xf32> to vector<8x16xf32>
    %37 = math.tanh %36 : vector<8x16xf32>
    %38 = arith.mulf %34, %21 : vector<8x16xf32>
    %39 = arith.mulf %33, %37 : vector<8x16xf32>
    %40 = arith.addf %38, %39 : vector<8x16xf32>
    %41 = math.tanh %40 : vector<8x16xf32>
    %42 = arith.mulf %35, %41 : vector<8x16xf32>
    %43 = vector.extract_strided_slice %1 {offsets = [16, 0], sizes = [8, 64], strides = [1, 1]} : vector<48x64xf32> to vector<8x64xf32>
    %cst_9 = arith.constant dense<0.000000e+00> : vector<8x64xf32>
    %44 = tpu.matmul %42, %2, %cst_9 {dimension_numbers = #tpu.dot_dimension_numbers<[1], [0], [0], [1], [0, 0, 1, 1], [], []>} : vector<8x16xf32>, vector<16x64xf32>, vector<8x64xf32> -> vector<8x64xf32>
    %45 = arith.addf %43, %44 : vector<8x64xf32>
    %46 = vector.extract_strided_slice %45 {offsets = [0, 0], sizes = [8, 48], strides = [1, 1]} : vector<8x64xf32> to vector<8x48xf32>
    %47 = arith.negf %46 : vector<8x48xf32>
    %48 = math.exp %47 : vector<8x48xf32>
    %cst_10 = arith.constant 1.000000e+00 : f32
    %49 = vector.broadcast %cst_10 : f32 to vector<8x48xf32>
    %50 = arith.addf %49, %48 : vector<8x48xf32>
    %51 = arith.divf %49, %50 : vector<8x48xf32>
    %52 = vector.extract_strided_slice %51 {offsets = [0, 0], sizes = [8, 16], strides = [1, 1]} : vector<8x48xf32> to vector<8x16xf32>
    %53 = vector.extract_strided_slice %51 {offsets = [0, 16], sizes = [8, 16], strides = [1, 1]} : vector<8x48xf32> to vector<8x16xf32>
    %54 = vector.extract_strided_slice %51 {offsets = [0, 32], sizes = [8, 16], strides = [1, 1]} : vector<8x48xf32> to vector<8x16xf32>
    %55 = vector.extract_strided_slice %45 {offsets = [0, 48], sizes = [8, 16], strides = [1, 1]} : vector<8x64xf32> to vector<8x16xf32>
    %56 = math.tanh %55 : vector<8x16xf32>
    %57 = arith.mulf %53, %40 : vector<8x16xf32>
    %58 = arith.mulf %52, %56 : vector<8x16xf32>
    %59 = arith.addf %57, %58 : vector<8x16xf32>
    %60 = math.tanh %59 : vector<8x16xf32>
    %61 = arith.mulf %54, %60 : vector<8x16xf32>
    %62 = vector.extract_strided_slice %1 {offsets = [24, 0], sizes = [8, 64], strides = [1, 1]} : vector<48x64xf32> to vector<8x64xf32>
    %cst_11 = arith.constant dense<0.000000e+00> : vector<8x64xf32>
    %63 = tpu.matmul %61, %2, %cst_11 {dimension_numbers = #tpu.dot_dimension_numbers<[1], [0], [0], [1], [0, 0, 1, 1], [], []>} : vector<8x16xf32>, vector<16x64xf32>, vector<8x64xf32> -> vector<8x64xf32>
    %64 = arith.addf %62, %63 : vector<8x64xf32>
    %65 = vector.extract_strided_slice %64 {offsets = [0, 0], sizes = [8, 48], strides = [1, 1]} : vector<8x64xf32> to vector<8x48xf32>
    %66 = arith.negf %65 : vector<8x48xf32>
    %67 = math.exp %66 : vector<8x48xf32>
    %cst_12 = arith.constant 1.000000e+00 : f32
    %68 = vector.broadcast %cst_12 : f32 to vector<8x48xf32>
    %69 = arith.addf %68, %67 : vector<8x48xf32>
    %70 = arith.divf %68, %69 : vector<8x48xf32>
    %71 = vector.extract_strided_slice %70 {offsets = [0, 0], sizes = [8, 16], strides = [1, 1]} : vector<8x48xf32> to vector<8x16xf32>
    %72 = vector.extract_strided_slice %70 {offsets = [0, 16], sizes = [8, 16], strides = [1, 1]} : vector<8x48xf32> to vector<8x16xf32>
    %73 = vector.extract_strided_slice %70 {offsets = [0, 32], sizes = [8, 16], strides = [1, 1]} : vector<8x48xf32> to vector<8x16xf32>
    %74 = vector.extract_strided_slice %64 {offsets = [0, 48], sizes = [8, 16], strides = [1, 1]} : vector<8x64xf32> to vector<8x16xf32>
    %75 = math.tanh %74 : vector<8x16xf32>
    %76 = arith.mulf %72, %59 : vector<8x16xf32>
    %77 = arith.mulf %71, %75 : vector<8x16xf32>
    %78 = arith.addf %76, %77 : vector<8x16xf32>
    %79 = math.tanh %78 : vector<8x16xf32>
    %80 = arith.mulf %73, %79 : vector<8x16xf32>
    %81 = vector.extract_strided_slice %1 {offsets = [32, 0], sizes = [8, 64], strides = [1, 1]} : vector<48x64xf32> to vector<8x64xf32>
    %cst_13 = arith.constant dense<0.000000e+00> : vector<8x64xf32>
    %82 = tpu.matmul %80, %2, %cst_13 {dimension_numbers = #tpu.dot_dimension_numbers<[1], [0], [0], [1], [0, 0, 1, 1], [], []>} : vector<8x16xf32>, vector<16x64xf32>, vector<8x64xf32> -> vector<8x64xf32>
    %83 = arith.addf %81, %82 : vector<8x64xf32>
    %84 = vector.extract_strided_slice %83 {offsets = [0, 0], sizes = [8, 48], strides = [1, 1]} : vector<8x64xf32> to vector<8x48xf32>
    %85 = arith.negf %84 : vector<8x48xf32>
    %86 = math.exp %85 : vector<8x48xf32>
    %cst_14 = arith.constant 1.000000e+00 : f32
    %87 = vector.broadcast %cst_14 : f32 to vector<8x48xf32>
    %88 = arith.addf %87, %86 : vector<8x48xf32>
    %89 = arith.divf %87, %88 : vector<8x48xf32>
    %90 = vector.extract_strided_slice %89 {offsets = [0, 0], sizes = [8, 16], strides = [1, 1]} : vector<8x48xf32> to vector<8x16xf32>
    %91 = vector.extract_strided_slice %89 {offsets = [0, 16], sizes = [8, 16], strides = [1, 1]} : vector<8x48xf32> to vector<8x16xf32>
    %92 = vector.extract_strided_slice %89 {offsets = [0, 32], sizes = [8, 16], strides = [1, 1]} : vector<8x48xf32> to vector<8x16xf32>
    %93 = vector.extract_strided_slice %83 {offsets = [0, 48], sizes = [8, 16], strides = [1, 1]} : vector<8x64xf32> to vector<8x16xf32>
    %94 = math.tanh %93 : vector<8x16xf32>
    %95 = arith.mulf %91, %78 : vector<8x16xf32>
    %96 = arith.mulf %90, %94 : vector<8x16xf32>
    %97 = arith.addf %95, %96 : vector<8x16xf32>
    %98 = math.tanh %97 : vector<8x16xf32>
    %99 = arith.mulf %92, %98 : vector<8x16xf32>
    %100 = vector.extract_strided_slice %1 {offsets = [40, 0], sizes = [8, 64], strides = [1, 1]} : vector<48x64xf32> to vector<8x64xf32>
    %cst_15 = arith.constant dense<0.000000e+00> : vector<8x64xf32>
    %101 = tpu.matmul %99, %2, %cst_15 {dimension_numbers = #tpu.dot_dimension_numbers<[1], [0], [0], [1], [0, 0, 1, 1], [], []>} : vector<8x16xf32>, vector<16x64xf32>, vector<8x64xf32> -> vector<8x64xf32>
    %102 = arith.addf %100, %101 : vector<8x64xf32>
    %103 = vector.extract_strided_slice %102 {offsets = [0, 0], sizes = [8, 48], strides = [1, 1]} : vector<8x64xf32> to vector<8x48xf32>
    %104 = arith.negf %103 : vector<8x48xf32>
    %105 = math.exp %104 : vector<8x48xf32>
    %cst_16 = arith.constant 1.000000e+00 : f32
    %106 = vector.broadcast %cst_16 : f32 to vector<8x48xf32>
    %107 = arith.addf %106, %105 : vector<8x48xf32>
    %108 = arith.divf %106, %107 : vector<8x48xf32>
    %109 = vector.extract_strided_slice %108 {offsets = [0, 0], sizes = [8, 16], strides = [1, 1]} : vector<8x48xf32> to vector<8x16xf32>
    %110 = vector.extract_strided_slice %108 {offsets = [0, 16], sizes = [8, 16], strides = [1, 1]} : vector<8x48xf32> to vector<8x16xf32>
    %111 = vector.extract_strided_slice %108 {offsets = [0, 32], sizes = [8, 16], strides = [1, 1]} : vector<8x48xf32> to vector<8x16xf32>
    %112 = vector.extract_strided_slice %102 {offsets = [0, 48], sizes = [8, 16], strides = [1, 1]} : vector<8x64xf32> to vector<8x16xf32>
    %113 = math.tanh %112 : vector<8x16xf32>
    %114 = arith.mulf %110, %97 : vector<8x16xf32>
    %115 = arith.mulf %109, %113 : vector<8x16xf32>
    %116 = arith.addf %114, %115 : vector<8x16xf32>
    %117 = math.tanh %116 : vector<8x16xf32>
    %118 = arith.mulf %111, %117 : vector<8x16xf32>
    %c0_17 = arith.constant 0 : index
    %c0_18 = arith.constant 0 : index
    %c0_19 = arith.constant 0 : index
    %119 = vector.load %arg2[%c0_17, %c0_18, %c0_19] : memref<1x8x128xf32, #tpu.memory_space<vmem>>, vector<1x8x128xf32>
    %120 = vector.shape_cast %119 : vector<1x8x128xf32> to vector<8x128xf32>
    %c0_20 = arith.constant 0 : index
    %c0_21 = arith.constant 0 : index
    %121 = vector.load %arg4[%c0_20, %c0_21] : memref<16x128xf32, #tpu.memory_space<vmem>>, vector<16x128xf32>
    %cst_22 = arith.constant dense<0.000000e+00> : vector<8x128xf32>
    %122 = tpu.matmul %118, %121, %cst_22 {dimension_numbers = #tpu.dot_dimension_numbers<[1], [0], [0], [1], [0, 0, 1, 1], [], []>} : vector<8x16xf32>, vector<16x128xf32>, vector<8x128xf32> -> vector<8x128xf32>
    %123 = arith.addf %120, %122 : vector<8x128xf32>
    %c0_23 = arith.constant 0 : index
    %c0_24 = arith.constant 0 : index
    %124 = vector.load %arg5[%c0_23, %c0_24] : memref<32x128xf32, #tpu.memory_space<vmem>>, vector<32x128xf32>
    %cst_25 = arith.constant 0.000000e+00 : f32
    %125 = vector.broadcast %cst_25 : f32 to vector<1x32xf32>
    %cst_26 = arith.constant 0.000000e+00 : f32
    %126 = vector.broadcast %cst_26 : f32 to vector<1x32xf32>
    %127 = vector.extract_strided_slice %123 {offsets = [0, 0], sizes = [1, 128], strides = [1, 1]} : vector<8x128xf32> to vector<1x128xf32>
    %cst_27 = arith.constant dense<0.000000e+00> : vector<1x128xf32>
    %128 = tpu.matmul %125, %124, %cst_27 {dimension_numbers = #tpu.dot_dimension_numbers<[1], [0], [0], [1], [0, 0, 1, 1], [], []>} : vector<1x32xf32>, vector<32x128xf32>, vector<1x128xf32> -> vector<1x128xf32>
    %129 = arith.addf %127, %128 : vector<1x128xf32>
    %130 = vector.extract_strided_slice %129 {offsets = [0, 0], sizes = [1, 96], strides = [1, 1]} : vector<1x128xf32> to vector<1x96xf32>
    %131 = arith.negf %130 : vector<1x96xf32>
    %132 = math.exp %131 : vector<1x96xf32>
    %cst_28 = arith.constant 1.000000e+00 : f32
    %133 = vector.broadcast %cst_28 : f32 to vector<1x96xf32>
    %134 = arith.addf %133, %132 : vector<1x96xf32>
    %135 = arith.divf %133, %134 : vector<1x96xf32>
    %136 = vector.extract_strided_slice %135 {offsets = [0, 0], sizes = [1, 32], strides = [1, 1]} : vector<1x96xf32> to vector<1x32xf32>
    %137 = vector.extract_strided_slice %135 {offsets = [0, 32], sizes = [1, 32], strides = [1, 1]} : vector<1x96xf32> to vector<1x32xf32>
    %138 = vector.extract_strided_slice %135 {offsets = [0, 64], sizes = [1, 32], strides = [1, 1]} : vector<1x96xf32> to vector<1x32xf32>
    %139 = vector.extract_strided_slice %129 {offsets = [0, 96], sizes = [1, 32], strides = [1, 1]} : vector<1x128xf32> to vector<1x32xf32>
    %140 = math.tanh %139 : vector<1x32xf32>
    %141 = arith.mulf %137, %126 : vector<1x32xf32>
    %142 = arith.mulf %136, %140 : vector<1x32xf32>
    %143 = arith.addf %141, %142 : vector<1x32xf32>
    %144 = math.tanh %143 : vector<1x32xf32>
    %145 = arith.mulf %138, %144 : vector<1x32xf32>
    %146 = vector.extract_strided_slice %123 {offsets = [1, 0], sizes = [1, 128], strides = [1, 1]} : vector<8x128xf32> to vector<1x128xf32>
    %cst_29 = arith.constant dense<0.000000e+00> : vector<1x128xf32>
    %147 = tpu.matmul %145, %124, %cst_29 {dimension_numbers = #tpu.dot_dimension_numbers<[1], [0], [0], [1], [0, 0, 1, 1], [], []>} : vector<1x32xf32>, vector<32x128xf32>, vector<1x128xf32> -> vector<1x128xf32>
    %148 = arith.addf %146, %147 : vector<1x128xf32>
    %149 = vector.extract_strided_slice %148 {offsets = [0, 0], sizes = [1, 96], strides = [1, 1]} : vector<1x128xf32> to vector<1x96xf32>
    %150 = arith.negf %149 : vector<1x96xf32>
    %151 = math.exp %150 : vector<1x96xf32>
    %cst_30 = arith.constant 1.000000e+00 : f32
    %152 = vector.broadcast %cst_30 : f32 to vector<1x96xf32>
    %153 = arith.addf %152, %151 : vector<1x96xf32>
    %154 = arith.divf %152, %153 : vector<1x96xf32>
    %155 = vector.extract_strided_slice %154 {offsets = [0, 0], sizes = [1, 32], strides = [1, 1]} : vector<1x96xf32> to vector<1x32xf32>
    %156 = vector.extract_strided_slice %154 {offsets = [0, 32], sizes = [1, 32], strides = [1, 1]} : vector<1x96xf32> to vector<1x32xf32>
    %157 = vector.extract_strided_slice %154 {offsets = [0, 64], sizes = [1, 32], strides = [1, 1]} : vector<1x96xf32> to vector<1x32xf32>
    %158 = vector.extract_strided_slice %148 {offsets = [0, 96], sizes = [1, 32], strides = [1, 1]} : vector<1x128xf32> to vector<1x32xf32>
    %159 = math.tanh %158 : vector<1x32xf32>
    %160 = arith.mulf %156, %143 : vector<1x32xf32>
    %161 = arith.mulf %155, %159 : vector<1x32xf32>
    %162 = arith.addf %160, %161 : vector<1x32xf32>
    %163 = math.tanh %162 : vector<1x32xf32>
    %164 = arith.mulf %157, %163 : vector<1x32xf32>
    %165 = vector.extract_strided_slice %123 {offsets = [2, 0], sizes = [1, 128], strides = [1, 1]} : vector<8x128xf32> to vector<1x128xf32>
    %cst_31 = arith.constant dense<0.000000e+00> : vector<1x128xf32>
    %166 = tpu.matmul %164, %124, %cst_31 {dimension_numbers = #tpu.dot_dimension_numbers<[1], [0], [0], [1], [0, 0, 1, 1], [], []>} : vector<1x32xf32>, vector<32x128xf32>, vector<1x128xf32> -> vector<1x128xf32>
    %167 = arith.addf %165, %166 : vector<1x128xf32>
    %168 = vector.extract_strided_slice %167 {offsets = [0, 0], sizes = [1, 96], strides = [1, 1]} : vector<1x128xf32> to vector<1x96xf32>
    %169 = arith.negf %168 : vector<1x96xf32>
    %170 = math.exp %169 : vector<1x96xf32>
    %cst_32 = arith.constant 1.000000e+00 : f32
    %171 = vector.broadcast %cst_32 : f32 to vector<1x96xf32>
    %172 = arith.addf %171, %170 : vector<1x96xf32>
    %173 = arith.divf %171, %172 : vector<1x96xf32>
    %174 = vector.extract_strided_slice %173 {offsets = [0, 0], sizes = [1, 32], strides = [1, 1]} : vector<1x96xf32> to vector<1x32xf32>
    %175 = vector.extract_strided_slice %173 {offsets = [0, 32], sizes = [1, 32], strides = [1, 1]} : vector<1x96xf32> to vector<1x32xf32>
    %176 = vector.extract_strided_slice %173 {offsets = [0, 64], sizes = [1, 32], strides = [1, 1]} : vector<1x96xf32> to vector<1x32xf32>
    %177 = vector.extract_strided_slice %167 {offsets = [0, 96], sizes = [1, 32], strides = [1, 1]} : vector<1x128xf32> to vector<1x32xf32>
    %178 = math.tanh %177 : vector<1x32xf32>
    %179 = arith.mulf %175, %162 : vector<1x32xf32>
    %180 = arith.mulf %174, %178 : vector<1x32xf32>
    %181 = arith.addf %179, %180 : vector<1x32xf32>
    %182 = math.tanh %181 : vector<1x32xf32>
    %183 = arith.mulf %176, %182 : vector<1x32xf32>
    %184 = vector.extract_strided_slice %123 {offsets = [3, 0], sizes = [1, 128], strides = [1, 1]} : vector<8x128xf32> to vector<1x128xf32>
    %cst_33 = arith.constant dense<0.000000e+00> : vector<1x128xf32>
    %185 = tpu.matmul %183, %124, %cst_33 {dimension_numbers = #tpu.dot_dimension_numbers<[1], [0], [0], [1], [0, 0, 1, 1], [], []>} : vector<1x32xf32>, vector<32x128xf32>, vector<1x128xf32> -> vector<1x128xf32>
    %186 = arith.addf %184, %185 : vector<1x128xf32>
    %187 = vector.extract_strided_slice %186 {offsets = [0, 0], sizes = [1, 96], strides = [1, 1]} : vector<1x128xf32> to vector<1x96xf32>
    %188 = arith.negf %187 : vector<1x96xf32>
    %189 = math.exp %188 : vector<1x96xf32>
    %cst_34 = arith.constant 1.000000e+00 : f32
    %190 = vector.broadcast %cst_34 : f32 to vector<1x96xf32>
    %191 = arith.addf %190, %189 : vector<1x96xf32>
    %192 = arith.divf %190, %191 : vector<1x96xf32>
    %193 = vector.extract_strided_slice %192 {offsets = [0, 0], sizes = [1, 32], strides = [1, 1]} : vector<1x96xf32> to vector<1x32xf32>
    %194 = vector.extract_strided_slice %192 {offsets = [0, 32], sizes = [1, 32], strides = [1, 1]} : vector<1x96xf32> to vector<1x32xf32>
    %195 = vector.extract_strided_slice %192 {offsets = [0, 64], sizes = [1, 32], strides = [1, 1]} : vector<1x96xf32> to vector<1x32xf32>
    %196 = vector.extract_strided_slice %186 {offsets = [0, 96], sizes = [1, 32], strides = [1, 1]} : vector<1x128xf32> to vector<1x32xf32>
    %197 = math.tanh %196 : vector<1x32xf32>
    %198 = arith.mulf %194, %181 : vector<1x32xf32>
    %199 = arith.mulf %193, %197 : vector<1x32xf32>
    %200 = arith.addf %198, %199 : vector<1x32xf32>
    %201 = math.tanh %200 : vector<1x32xf32>
    %202 = arith.mulf %195, %201 : vector<1x32xf32>
    %203 = vector.extract_strided_slice %123 {offsets = [4, 0], sizes = [1, 128], strides = [1, 1]} : vector<8x128xf32> to vector<1x128xf32>
    %cst_35 = arith.constant dense<0.000000e+00> : vector<1x128xf32>
    %204 = tpu.matmul %202, %124, %cst_35 {dimension_numbers = #tpu.dot_dimension_numbers<[1], [0], [0], [1], [0, 0, 1, 1], [], []>} : vector<1x32xf32>, vector<32x128xf32>, vector<1x128xf32> -> vector<1x128xf32>
    %205 = arith.addf %203, %204 : vector<1x128xf32>
    %206 = vector.extract_strided_slice %205 {offsets = [0, 0], sizes = [1, 96], strides = [1, 1]} : vector<1x128xf32> to vector<1x96xf32>
    %207 = arith.negf %206 : vector<1x96xf32>
    %208 = math.exp %207 : vector<1x96xf32>
    %cst_36 = arith.constant 1.000000e+00 : f32
    %209 = vector.broadcast %cst_36 : f32 to vector<1x96xf32>
    %210 = arith.addf %209, %208 : vector<1x96xf32>
    %211 = arith.divf %209, %210 : vector<1x96xf32>
    %212 = vector.extract_strided_slice %211 {offsets = [0, 0], sizes = [1, 32], strides = [1, 1]} : vector<1x96xf32> to vector<1x32xf32>
    %213 = vector.extract_strided_slice %211 {offsets = [0, 32], sizes = [1, 32], strides = [1, 1]} : vector<1x96xf32> to vector<1x32xf32>
    %214 = vector.extract_strided_slice %211 {offsets = [0, 64], sizes = [1, 32], strides = [1, 1]} : vector<1x96xf32> to vector<1x32xf32>
    %215 = vector.extract_strided_slice %205 {offsets = [0, 96], sizes = [1, 32], strides = [1, 1]} : vector<1x128xf32> to vector<1x32xf32>
    %216 = math.tanh %215 : vector<1x32xf32>
    %217 = arith.mulf %213, %200 : vector<1x32xf32>
    %218 = arith.mulf %212, %216 : vector<1x32xf32>
    %219 = arith.addf %217, %218 : vector<1x32xf32>
    %220 = math.tanh %219 : vector<1x32xf32>
    %221 = arith.mulf %214, %220 : vector<1x32xf32>
    %222 = vector.extract_strided_slice %123 {offsets = [5, 0], sizes = [1, 128], strides = [1, 1]} : vector<8x128xf32> to vector<1x128xf32>
    %cst_37 = arith.constant dense<0.000000e+00> : vector<1x128xf32>
    %223 = tpu.matmul %221, %124, %cst_37 {dimension_numbers = #tpu.dot_dimension_numbers<[1], [0], [0], [1], [0, 0, 1, 1], [], []>} : vector<1x32xf32>, vector<32x128xf32>, vector<1x128xf32> -> vector<1x128xf32>
    %224 = arith.addf %222, %223 : vector<1x128xf32>
    %225 = vector.extract_strided_slice %224 {offsets = [0, 0], sizes = [1, 96], strides = [1, 1]} : vector<1x128xf32> to vector<1x96xf32>
    %226 = arith.negf %225 : vector<1x96xf32>
    %227 = math.exp %226 : vector<1x96xf32>
    %cst_38 = arith.constant 1.000000e+00 : f32
    %228 = vector.broadcast %cst_38 : f32 to vector<1x96xf32>
    %229 = arith.addf %228, %227 : vector<1x96xf32>
    %230 = arith.divf %228, %229 : vector<1x96xf32>
    %231 = vector.extract_strided_slice %230 {offsets = [0, 0], sizes = [1, 32], strides = [1, 1]} : vector<1x96xf32> to vector<1x32xf32>
    %232 = vector.extract_strided_slice %230 {offsets = [0, 32], sizes = [1, 32], strides = [1, 1]} : vector<1x96xf32> to vector<1x32xf32>
    %233 = vector.extract_strided_slice %230 {offsets = [0, 64], sizes = [1, 32], strides = [1, 1]} : vector<1x96xf32> to vector<1x32xf32>
    %234 = vector.extract_strided_slice %224 {offsets = [0, 96], sizes = [1, 32], strides = [1, 1]} : vector<1x128xf32> to vector<1x32xf32>
    %235 = math.tanh %234 : vector<1x32xf32>
    %236 = arith.mulf %232, %219 : vector<1x32xf32>
    %237 = arith.mulf %231, %235 : vector<1x32xf32>
    %238 = arith.addf %236, %237 : vector<1x32xf32>
    %239 = math.tanh %238 : vector<1x32xf32>
    %240 = arith.mulf %233, %239 : vector<1x32xf32>
    %241 = vector.extract_strided_slice %123 {offsets = [6, 0], sizes = [1, 128], strides = [1, 1]} : vector<8x128xf32> to vector<1x128xf32>
    %cst_39 = arith.constant dense<0.000000e+00> : vector<1x128xf32>
    %242 = tpu.matmul %240, %124, %cst_39 {dimension_numbers = #tpu.dot_dimension_numbers<[1], [0], [0], [1], [0, 0, 1, 1], [], []>} : vector<1x32xf32>, vector<32x128xf32>, vector<1x128xf32> -> vector<1x128xf32>
    %243 = arith.addf %241, %242 : vector<1x128xf32>
    %244 = vector.extract_strided_slice %243 {offsets = [0, 0], sizes = [1, 96], strides = [1, 1]} : vector<1x128xf32> to vector<1x96xf32>
    %245 = arith.negf %244 : vector<1x96xf32>
    %246 = math.exp %245 : vector<1x96xf32>
    %cst_40 = arith.constant 1.000000e+00 : f32
    %247 = vector.broadcast %cst_40 : f32 to vector<1x96xf32>
    %248 = arith.addf %247, %246 : vector<1x96xf32>
    %249 = arith.divf %247, %248 : vector<1x96xf32>
    %250 = vector.extract_strided_slice %249 {offsets = [0, 0], sizes = [1, 32], strides = [1, 1]} : vector<1x96xf32> to vector<1x32xf32>
    %251 = vector.extract_strided_slice %249 {offsets = [0, 32], sizes = [1, 32], strides = [1, 1]} : vector<1x96xf32> to vector<1x32xf32>
    %252 = vector.extract_strided_slice %249 {offsets = [0, 64], sizes = [1, 32], strides = [1, 1]} : vector<1x96xf32> to vector<1x32xf32>
    %253 = vector.extract_strided_slice %243 {offsets = [0, 96], sizes = [1, 32], strides = [1, 1]} : vector<1x128xf32> to vector<1x32xf32>
    %254 = math.tanh %253 : vector<1x32xf32>
    %255 = arith.mulf %251, %238 : vector<1x32xf32>
    %256 = arith.mulf %250, %254 : vector<1x32xf32>
    %257 = arith.addf %255, %256 : vector<1x32xf32>
    %258 = math.tanh %257 : vector<1x32xf32>
    %259 = arith.mulf %252, %258 : vector<1x32xf32>
    %260 = vector.extract_strided_slice %123 {offsets = [7, 0], sizes = [1, 128], strides = [1, 1]} : vector<8x128xf32> to vector<1x128xf32>
    %cst_41 = arith.constant dense<0.000000e+00> : vector<1x128xf32>
    %261 = tpu.matmul %259, %124, %cst_41 {dimension_numbers = #tpu.dot_dimension_numbers<[1], [0], [0], [1], [0, 0, 1, 1], [], []>} : vector<1x32xf32>, vector<32x128xf32>, vector<1x128xf32> -> vector<1x128xf32>
    %262 = arith.addf %260, %261 : vector<1x128xf32>
    %263 = vector.extract_strided_slice %262 {offsets = [0, 0], sizes = [1, 96], strides = [1, 1]} : vector<1x128xf32> to vector<1x96xf32>
    %264 = arith.negf %263 : vector<1x96xf32>
    %265 = math.exp %264 : vector<1x96xf32>
    %cst_42 = arith.constant 1.000000e+00 : f32
    %266 = vector.broadcast %cst_42 : f32 to vector<1x96xf32>
    %267 = arith.addf %266, %265 : vector<1x96xf32>
    %268 = arith.divf %266, %267 : vector<1x96xf32>
    %269 = vector.extract_strided_slice %268 {offsets = [0, 0], sizes = [1, 32], strides = [1, 1]} : vector<1x96xf32> to vector<1x32xf32>
    %270 = vector.extract_strided_slice %268 {offsets = [0, 32], sizes = [1, 32], strides = [1, 1]} : vector<1x96xf32> to vector<1x32xf32>
    %271 = vector.extract_strided_slice %268 {offsets = [0, 64], sizes = [1, 32], strides = [1, 1]} : vector<1x96xf32> to vector<1x32xf32>
    %272 = vector.extract_strided_slice %262 {offsets = [0, 96], sizes = [1, 32], strides = [1, 1]} : vector<1x128xf32> to vector<1x32xf32>
    %273 = math.tanh %272 : vector<1x32xf32>
    %274 = arith.mulf %270, %257 : vector<1x32xf32>
    %275 = arith.mulf %269, %273 : vector<1x32xf32>
    %276 = arith.addf %274, %275 : vector<1x32xf32>
    %277 = math.tanh %276 : vector<1x32xf32>
    %278 = arith.mulf %271, %277 : vector<1x32xf32>
    %279 = tpu.concatenate %145, %164, %183, %202, %221, %240, %259, %278 in 0 : vector<1x32xf32>, vector<1x32xf32>, vector<1x32xf32>, vector<1x32xf32>, vector<1x32xf32>, vector<1x32xf32>, vector<1x32xf32>, vector<1x32xf32> -> vector<8x32xf32>
    %c0_43 = arith.constant 0 : index
    %c0_44 = arith.constant 0 : index
    %280 = vector.load %arg6[%c0_43, %c0_44] : memref<32x128xf32, #tpu.memory_space<vmem>>, vector<32x128xf32>
    %cst_45 = arith.constant dense<0.000000e+00> : vector<8x128xf32>
    %281 = tpu.matmul %279, %280, %cst_45 {dimension_numbers = #tpu.dot_dimension_numbers<[1], [0], [0], [1], [0, 0, 1, 1], [], []>} : vector<8x32xf32>, vector<32x128xf32>, vector<8x128xf32> -> vector<8x128xf32>
    %c0_46 = arith.constant 0 : index
    %c0_47 = arith.constant 0 : index
    %282 = vector.load %arg7[%c0_46, %c0_47] : memref<1x128xf32, #tpu.memory_space<vmem>>, vector<1x128xf32>
    %283 = vector.broadcast %282 : vector<1x128xf32> to vector<8x128xf32>
    %284 = arith.addf %281, %283 : vector<8x128xf32>
    %cst_48 = arith.constant dense<0xFF800000> : vector<8xf32>
    %285 = vector.multi_reduction <maximumf>, %284, %cst_48 [1] : vector<8x128xf32> to vector<8xf32>
    %286 = vector.shape_cast %285 : vector<8xf32> to vector<8x1xf32>
    %287 = vector.broadcast %286 : vector<8x1xf32> to vector<8x128xf32>
    %288 = arith.subf %284, %287 : vector<8x128xf32>
    %289 = math.exp %288 : vector<8x128xf32>
    %cst_49 = arith.constant dense<0.000000e+00> : vector<8xf32>
    %290 = vector.multi_reduction <add>, %289, %cst_49 [1] : vector<8x128xf32> to vector<8xf32>
    %291 = vector.shape_cast %290 : vector<8xf32> to vector<8x1xf32>
    %292 = math.log %291 : vector<8x1xf32>
    %293 = vector.broadcast %292 : vector<8x1xf32> to vector<8x128xf32>
    %294 = arith.subf %288, %293 : vector<8x128xf32>
    %c0_50 = arith.constant 0 : index
    %c0_51 = arith.constant 0 : index
    %c0_52 = arith.constant 0 : index
    %295 = vector.load %arg8[%c0_50, %c0_51, %c0_52] : memref<1x8x128xf32, #tpu.memory_space<vmem>>, vector<1x8x128xf32>
    %296 = vector.shape_cast %295 : vector<1x8x128xf32> to vector<8x128xf32>
    %297 = vector.shape_cast %294 : vector<8x128xf32> to vector<1x8x128xf32>
    tpu.vector_store %arg8[%c0_50, %c0_51, %c0_52], %297 {strides = array<i32>} : memref<1x8x128xf32, #tpu.memory_space<vmem>>, vector<1x8x128xf32>,
    return
  }
  func.func @transform_0(%arg0: i32) -> (i32, i32, i32) {
    %c0_i32 = arith.constant 0 : i32
    %c0_i32_0 = arith.constant 0 : i32
    %c0_i32_1 = arith.constant 0 : i32
    return %arg0, %c0_i32, %c0_i32_0 : i32, i32, i32
  }
  func.func @transform_1(%arg0: i32) -> (i32, i32, i32) {
    %c0_i32 = arith.constant 0 : i32
    %c0_i32_0 = arith.constant 0 : i32
    %c0_i32_1 = arith.constant 0 : i32
    return %arg0, %c0_i32, %c0_i32_0 : i32, i32, i32
  }
  func.func @transform_2(%arg0: i32) -> (i32, i32) {
    %c0_i32 = arith.constant 0 : i32
    %c0_i32_0 = arith.constant 0 : i32
    %c0_i32_1 = arith.constant 0 : i32
    return %c0_i32, %c0_i32_0 : i32, i32
  }
  func.func @transform_3(%arg0: i32) -> (i32, i32) {
    %c0_i32 = arith.constant 0 : i32
    %c0_i32_0 = arith.constant 0 : i32
    %c0_i32_1 = arith.constant 0 : i32
    return %c0_i32, %c0_i32_0 : i32, i32
  }
  func.func @transform_4(%arg0: i32) -> (i32, i32) {
    %c0_i32 = arith.constant 0 : i32
    %c0_i32_0 = arith.constant 0 : i32
    %c0_i32_1 = arith.constant 0 : i32
    return %c0_i32, %c0_i32_0 : i32, i32
  }
  func.func @transform_5(%arg0: i32) -> (i32, i32) {
    %c0_i32 = arith.constant 0 : i32
    %c0_i32_0 = arith.constant 0 : i32
    %c0_i32_1 = arith.constant 0 : i32
    return %c0_i32, %c0_i32_0 : i32, i32
  }
  func.func @transform_6(%arg0: i32) -> (i32, i32) {
    %c0_i32 = arith.constant 0 : i32
    %c0_i32_0 = arith.constant 0 : i32
    %c0_i32_1 = arith.constant 0 : i32
    return %c0_i32, %c0_i32_0 : i32, i32
  }
  func.func @transform_7(%arg0: i32) -> (i32, i32, i32) {
    %c0_i32 = arith.constant 0 : i32
    %c0_i32_0 = arith.constant 0 : i32
    %c0_i32_1 = arith.constant 0 : i32
    return %arg0, %c0_i32, %c0_i32_0 : i32, i32, i32
  }
}

</mosaic_0001>

<bundles_post_ra>
// kernel: tpu_custom_call.1
= control target key start
LH: loop header
LB: loop body
LE: loop exit
PB: predicated region body
PF: predicated region fallthrough
CT: control target
= control target key end

     0   :  { %12 = vsyncpa [#allocation3], 0  ;;  %s2717_s0 = inlined_call_operand.hbm [shape: f32[1,48,64], index: 0, kind: input, shape index: {}]   ;;  %s2718_s1 = inlined_call_operand.hbm [shape: f32[1,8,128], index: 1, kind: input, shape index: {}]   ;;  %s2719_s2 = inlined_call_operand.hbm [shape: f32[16,64], index: 2, kind: input, shape index: {}]   ;;  %s2720_s3 = inlined_call_operand.hbm [shape: f32[16,128], index: 3, kind: input, shape index: {}]   ;;  %s2721_s4 = inlined_call_operand.hbm [shape: f32[32,128], index: 4, kind: input, shape index: {}]   ;;  %s2722_s5 = inlined_call_operand.hbm [shape: f32[32,128], index: 5, kind: input, shape index: {}]   ;;  %s2723_s6 = inlined_call_operand.vmem [shape: f32[1,128], index: 6, kind: input, shape index: {}]   ;;  %s2724_s7 = inlined_call_operand.hbm [shape: f32[1,8,128], index: 7, kind: output, shape index: {}]  }
   0x1   :  { %13 = vsyncpa [#allocation6], 0 }
   0x2   :  { %14 = vsyncpa [#allocation9], 0 }
   0x3   :  { %15 = vsyncpa [#allocation12], 0 }
   0x4   :  { %16 = vsyncpa [#allocation4], 0  ;;  %s2387_s24 = smov [#allocation5]   ;;  %s2223_s28 = scalar_lea.hbm %s2718_s1, 128 }
   0x5   :  { %s35_s25 = sshll.u32 %s2387_s24, 4  ;;  %p2224_p0 = scmp.ne.s32.totalorder %s2718_s1, %s2223_s28  ;;  %s36_s25 = int_to_ptr.vmem [resolvable:$true] %s35_s25 }
   0x6   :  { %p2227_p1 = scmp.lt.u32.totalorder %s2223_s28, %s2718_s1 }
   0x8   :  { %p2229_p2 = pnand %p2227_p1, %p2224_p0 }
   0xa   :  { %2232 = shalt.err (!%p2229_p2)
}
   0xb   :  { %s2233_s10 = scalar_lea.vmem %s36_s25, 128  ;;  %p2238_p4 = scmp.lt.s32.totalorder %s36_s25, %s36_s25 }
   0xc   :  { %p2234_p3 = scmp.ne.s32.totalorder %s36_s25, %s2233_s10  ;;  %p2239_p5 = scmp.lt.s32.totalorder %s2233_s10, %s2233_s10 }
   0xe   :  { %p2240_p6 = por %p2239_p5, %p2238_p4 }
  0x10   :  { %p2241_p7 = pnand %p2240_p6, %p2234_p3 }
  0x12   :  { %2244 = shalt.err (!%p2241_p7)
}
  0x13   :  { %38 = dma.hbm_to_vmem [thread:$0]  %s2718_s1, 128, %s36_s25, [#allocation6]  }
  0x14   :  { %s2388_s13 = smov [#allocation8]   ;;  %s2389_s15 = smov [#allocation2]  }
  0x15   :  { %s56_s14 = sshll.u32 %s2388_s13, 4  ;;  %s22_s16 = sshll.u32 %s2389_s15, 4  ;;  %s57_s14 = int_to_ptr.vmem [resolvable:$true] %s56_s14  ;;  %s23_s16 = int_to_ptr.vmem [resolvable:$true] %s22_s16 }
  0x16   :  { %s2245_s19 = scalar_lea.hbm %s2720_s3, 256 }
  0x17   :  { %p2246_p8 = scmp.ne.s32.totalorder %s2720_s3, %s2245_s19  ;;  %p2249_p9 = scmp.lt.u32.totalorder %s2245_s19, %s2720_s3 }
  0x19   :  { %p2251_p10 = pnand %p2249_p9, %p2246_p8 }
  0x1b   :  { %2254 = shalt.err (!%p2251_p10)
}
  0x1c   :  { %s2255_s1 = scalar_lea.vmem %s57_s14, 256  ;;  %p2260_p12 = scmp.lt.s32.totalorder %s57_s14, %s57_s14 }
  0x1d   :  { %p2256_p11 = scmp.ne.s32.totalorder %s57_s14, %s2255_s1  ;;  %p2261_p13 = scmp.lt.s32.totalorder %s2255_s1, %s2255_s1 }
  0x1f   :  { %p2262_p0 = por %p2261_p13, %p2260_p12 }
  0x21   :  { %p2263_p1 = pnand %p2262_p0, %p2256_p11 }
  0x23   :  { %2266 = shalt.err (!%p2263_p1)
}
  0x24   :  { %s2390_s24 = smov 128   ;;  %s2391_s25 = smov 8  }
  0x25   :  { %62 = dma.hbm_to_vmem [thread:$0]  %s2720_s3, 256, %s57_s14, [#allocation9], %s2390_s24, %s2390_s24, %s2391_s25  }
  0x26   :  { %s2267_s30 = scalar_lea.hbm %s2717_s0, 768 }
  0x27   :  { %p2268_p2 = scmp.ne.s32.totalorder %s2717_s0, %s2267_s30  ;;  %p2271_p3 = scmp.lt.u32.totalorder %s2267_s30, %s2717_s0 }
  0x29   :  { %p2273_p4 = pnand %p2271_p3, %p2268_p2 }
  0x2b   :  { %2276 = shalt.err (!%p2273_p4)
}
  0x2c   :  { %s2277_s12 = scalar_lea.vmem %s23_s16, 768  ;;  %p2282_p6 = scmp.lt.s32.totalorder %s23_s16, %s23_s16 }
  0x2d   :  { %p2278_p5 = scmp.ne.s32.totalorder %s23_s16, %s2277_s12  ;;  %p2283_p7 = scmp.lt.s32.totalorder %s2277_s12, %s2277_s12 }
  0x2f   :  { %p2284_p8 = por %p2283_p7, %p2282_p6 }
  0x31   :  { %p2285_p9 = pnand %p2284_p8, %p2278_p5 }
  0x33   :  { %2288 = shalt.err (!%p2285_p9)
}
  0x34   :  { %28 = dma.hbm_to_vmem [thread:$0]  %s2717_s0, 768, %s23_s16, [#allocation3], %s2390_s24, %s2390_s24, %s2391_s25  }
  0x35   :  { %s2392_s14 = smov [#allocation7]   ;;  %s2393_s17 = smov [#allocation10]  }
  0x36   :  { %s44_s15 = sshll.u32 %s2392_s14, 4  ;;  %s68_s18 = sshll.u32 %s2393_s17, 4  ;;  %s45_s15 = int_to_ptr.vmem [resolvable:$true] %s44_s15  ;;  %s69_s18 = int_to_ptr.vmem [resolvable:$true] %s68_s18 }
  0x37   :  { %s2289_s21 = scalar_lea.hbm %s2719_s2, 256 }
  0x38   :  { %p2290_p10 = scmp.ne.s32.totalorder %s2719_s2, %s2289_s21  ;;  %p2293_p11 = scmp.lt.u32.totalorder %s2289_s21, %s2719_s2 }
  0x3a   :  { %p2295_p12 = pnand %p2293_p11, %p2290_p10 }
  0x3c   :  { %2298 = shalt.err (!%p2295_p12)
}
  0x3d   :  { %s2299_s0 = scalar_lea.vmem %s45_s15, 256  ;;  %p2304_p0 = scmp.lt.s32.totalorder %s45_s15, %s45_s15 }
  0x3e   :  { %p2300_p13 = scmp.ne.s32.totalorder %s45_s15, %s2299_s0  ;;  %p2305_p1 = scmp.lt.s32.totalorder %s2299_s0, %s2299_s0 }
  0x40   :  { %p2306_p2 = por %p2305_p1, %p2304_p0 }
  0x42   :  { %p2307_p3 = pnand %p2306_p2, %p2300_p13 }
  0x44   :  { %2310 = shalt.err (!%p2307_p3)
}
  0x45   :  { %50 = dma.hbm_to_vmem [thread:$0]  %s2719_s2, 256, %s45_s15, [#allocation6], %s2390_s24, %s2390_s24, %s2391_s25  }
  0x46   :  { %s2311_s30 = scalar_lea.hbm %s2721_s4, 512 }
  0x47   :  { %p2312_p4 = scmp.ne.s32.totalorder %s2721_s4, %s2311_s30  ;;  %p2315_p5 = scmp.lt.u32.totalorder %s2311_s30, %s2721_s4 }
  0x49   :  { %p2317_p6 = pnand %p2315_p5, %p2312_p4 }
  0x4b   :  { %2320 = shalt.err (!%p2317_p6)
}
  0x4c   :  { %s2321_s12 = scalar_lea.vmem %s69_s18, 512  ;;  %p2326_p8 = scmp.lt.s32.totalorder %s69_s18, %s69_s18 }
  0x4d   :  { %p2322_p7 = scmp.ne.s32.totalorder %s69_s18, %s2321_s12  ;;  %p2327_p9 = scmp.lt.s32.totalorder %s2321_s12, %s2321_s12 }
  0x4f   :  { %p2328_p10 = por %p2327_p9, %p2326_p8 }
  0x51   :  { %p2329_p11 = pnand %p2328_p10, %p2322_p7 }
  0x53   :  { %2332 = shalt.err (!%p2329_p11)
}
  0x54   :  { %74 = dma.hbm_to_vmem [thread:$0]  %s2721_s4, 512, %s69_s18, [#allocation9], %s2390_s24, %s2390_s24, %s2391_s25  }
  0x55   :  { %s2394_s13 = smov [#allocation11]   ;;  %s2333_s19 = scalar_lea.hbm %s2722_s5, 512 }
  0x56   :  { %s80_s14 = sshll.u32 %s2394_s13, 4  ;;  %p2334_p12 = scmp.ne.s32.totalorder %s2722_s5, %s2333_s19  ;;  %s81_s14 = int_to_ptr.vmem [resolvable:$true] %s80_s14 }
  0x57   :  { %p2337_p13 = scmp.lt.u32.totalorder %s2333_s19, %s2722_s5 }
  0x59   :  { %p2339_p0 = pnand %p2337_p13, %p2334_p12 }
  0x5b   :  { %2342 = shalt.err (!%p2339_p0)
}
  0x5c   :  { %s2343_s1 = scalar_lea.vmem %s81_s14, 512  ;;  %p2348_p2 = scmp.lt.s32.totalorder %s81_s14, %s81_s14 }
  0x5d   :  { %p2344_p1 = scmp.ne.s32.totalorder %s81_s14, %s2343_s1  ;;  %p2349_p3 = scmp.lt.s32.totalorder %s2343_s1, %s2343_s1 }
  0x5f   :  { %p2350_p4 = por %p2349_p3, %p2348_p2 }
  0x61   :  { %p2351_p5 = pnand %p2350_p4, %p2344_p1 }
  0x63   :  { %2354 = shalt.err (!%p2351_p5)
}
  0x64   :  { %86 = dma.hbm_to_vmem [thread:$0]  %s2722_s5, 512, %s81_s14, [#allocation12], %s2390_s24, %s2390_s24, %s2391_s25  }
  0x65   :  { %2377 = dma.done.wait [#allocation3], 768  }
  0x66   :  { %2378 = vsyncadd [#allocation3], 4294966528 }
  0x67   :  { %2379 = dma.done.wait [#allocation6], 384  }
  0x68   :  { %2380 = vsyncadd [#allocation6], 4294966912 }
  0x69   :  { %2381 = dma.done.wait [#allocation9], 768  }
  0x6a   :  { %2382 = vsyncadd [#allocation9], 4294966528 }
  0x6b   :  { %2383 = dma.done.wait [#allocation12], 512  }
  0x6c   :  { %2384 = vsyncadd [#allocation12], 4294966784  ;;  %v2395_v0 = vmov 0.0|0.0   ;;  %vm2396_vm0 = vmmov 0   ;;  %v2397_v1 = vmov 0.0   ;;  %v113_v2 = vld [vmem:[#allocation7] sm:$0xff] }
  0x6d   :  { %2015 = vmatprep.subr.bf16.mxu0 %v2395_v0  ;;  %1871 = vmatprep.mubr.msk.f32.mxu0 %vm2396_vm0, %v2397_v1  ;;  %v114_v3 = vld [vmem:[#allocation7 + $0x8] sm:$0xff]  ;;  %s2398_s5 = smov 80   ;;  %s2399_s24 = smov 16   ;;  %vm115_vm1 = vcmask 130048   ;;  %v108_v23 = vld [vmem:[#allocation2 + $0x8] sm:$0xff]  ;;  %v109_v41 = vld [vmem:[#allocation2 + $0x10] sm:$0xff] }
  0x6e   :  { %2018 = vmatprep.subr.bf16.mxu1 %v2395_v0  ;;  %1878 = vmatprep.mubr.msk.f32.mxu1 %vm2396_vm0, %v2397_v1  ;;  %v2537_v4 = vpack.c.bf16 %v114_v3, %v113_v2  ;;  %v107_v5 = vld [vmem:[#allocation2] sm:$0xff]  ;;  %s2400_s25 = smov 96   ;;  %v110_v59 = vld [vmem:[#allocation2 + $0x18] sm:$0xff]  ;;  %s2401_s26 = smov 32   ;;  %vm797_vm2 = vcmask 261120   ;;  %vm1643_vm3 = vcmask 1040384  }
  0x6f   :  { %s2402_s0 = smov 64   ;;  %vm1645_vm4 = vcmask 1041408   ;;  %vm1647_vm5 = vcmask 1042432   ;;  %vm1649_vm6 = vcmask 1043456   ;;  %vm1651_vm7 = vcmask 1044480   ;;  %s2403_s28 = smov [#allocation13]  }
  0x70   :  { %2017 = vmatpush3.bf16.msra.mxu0 %v2537_v4  ;;  %2020 = vmatpush3.bf16.msra.mxu1 %v2537_v4  ;;  %vm1653_vm8 = vcmask 1045504   ;;  %vm1655_vm9 = vcmask 1046528   ;;  %s1760_s29 = sshll.u32 %s2403_s28, 4  ;;  %s1761_s29 = int_to_ptr.vmem [resolvable:$true] %s1760_s29 }
  0x71   :  { %2021 = vmatprep.subr.bf16.mxu0 %v2395_v0  ;;  %2024 = vmatprep.subr.bf16.mxu1 %v2395_v0  ;;  %p2360_p7 = scmp.lt.s32.totalorder %s1761_s29, %s1761_s29 }
  0x73   :  { %1872 = vmatmul.mubr.f32.vlgmr.msra.gmra.mrb[0].mxu0 %v2397_v1 }
  0x74   :  { %2023 = vmatpush3.bf16.msra.mxu0 %v2537_v4  ;;  %1885 = vmatprep.mubr.msk.f32.mxu0 %vm2396_vm0, %v2397_v1 }
  0x75   :  { %2027 = vmatprep.subr.bf16.mxu0 %v2395_v0 }
 0x146   :  { %v185_v6 = vpop.f32.mrb[0].mxu0 }
 0x147   :  { %v189_v7 = vadd.f32 %v185_v6, %v107_v5  ;;  %v1873_v8 = vpop.f32.mrb[1].mxu0 }
 0x149   :  { %2107 = vtanh.f32 %v189_v7  ;;  %v1772_v10 = vmul.f32 -1.442695, %v189_v7 }
 0x14b   :  { %2109 = vpow2.f32 %v1772_v10 }
 0x153   :  { %v2108_v9 = vpop.eup %2107 }
 0x154   :  { %199 = vrot.lane.b32.xlu0 %v2108_v9, %s2398_s5 }
 0x155   :  { %v2110_v11 = vpop.eup %2109 }
 0x156   :  { %v193_v12 = vadd.f32 1.0, %v2110_v11 }
 0x158   :  { %2111 = vrcp.f32 %v193_v12 }
 0x162   :  { %v2112_v13 = vpop.eup %2111 }
 0x163   :  { %v197_v16 = vmul.f32 0.0, %v2112_v13 }
 0x1c6   :  { %v200_v14 = vpop.permute.xlu0 %199 }
 0x1c7   :  { %v202_v15 = vmul.f32 %v2112_v13, %v200_v14 }
 0x1c9   :  { %204 = vrot.lane.b32.xlu0 %v202_v15, %s2399_s24  ;;  %v111_v15 = vld [vmem:[#allocation2 + $0x20] sm:$0xff] }
 0x23b   :  { %v205_v17 = vpop.permute.xlu0 %204 }
 0x23c   :  { %v207_v18 = vadd.f32 %v205_v17, %v197_v16 }
 0x23e   :  { %2113 = vtanh.f32 %v207_v18 }
 0x248   :  { %v2114_v19 = vpop.eup %2113 }
 0x249   :  { %210 = vrot.lane.b32.xlu1 %v2114_v19, %s2399_s24 }
 0x2bb   :  { %v211_v20 = vpop.permute.xlu1 %210 }
 0x2bc   :  { %v213_v21 = vmul.f32 %v2112_v13, %v211_v20 }
 0x2be   :  { %215 = vrot.lane.b32.xlu1 %v213_v21, %s2400_s25 }
 0x330   :  { %v216_v22 = vpop.permute.xlu1 %215 }
 0x331   :  { %1879 = vmatmul.mubr.msk.f32.vlgmr.msra.gmra.mrb[0].mxu1 %vm115_vm1, %v216_v22 }
 0x332   :  { %2026 = vmatpush3.bf16.msra.mxu1 %v2537_v4  ;;  %1892 = vmatprep.mubr.msk.f32.mxu1 %vm2396_vm0, %v2397_v1 }
 0x333   :  { %2030 = vmatprep.subr.bf16.mxu1 %v2395_v0 }
 0x404   :  { %v285_v24 = vpop.f32.mrb[0].mxu1 }
 0x405   :  { %v289_v25 = vadd.f32 %v285_v24, %v108_v23  ;;  %v1880_v26 = vpop.f32.mrb[1].mxu1 }
 0x407   :  { %2115 = vtanh.f32 %v289_v25  ;;  %v1774_v28 = vmul.f32 -1.442695, %v289_v25 }
 0x409   :  { %2117 = vpow2.f32 %v1774_v28 }
 0x411   :  { %v2116_v27 = vpop.eup %2115 }
 0x412   :  { %299 = vrot.lane.b32.xlu0 %v2116_v27, %s2398_s5 }
 0x413   :  { %v2118_v29 = vpop.eup %2117 }
 0x414   :  { %v293_v30 = vadd.f32 1.0, %v2118_v29 }
 0x416   :  { %2119 = vrcp.f32 %v293_v30 }
 0x420   :  { %v2120_v31 = vpop.eup %2119 }
 0x421   :  { %v297_v34 = vmul.f32 %v2120_v31, %v207_v18 }
 0x484   :  { %v300_v32 = vpop.permute.xlu0 %299 }
 0x485   :  { %v302_v33 = vmul.f32 %v2120_v31, %v300_v32 }
 0x487   :  { %304 = vrot.lane.b32.xlu1 %v302_v33, %s2399_s24  ;;  %v112_v33 = vld [vmem:[#allocation2 + $0x28] sm:$0xff] }
 0x4f9   :  { %v305_v35 = vpop.permute.xlu1 %304 }
 0x4fa   :  { %v307_v36 = vadd.f32 %v305_v35, %v297_v34 }
 0x4fc   :  { %2121 = vtanh.f32 %v307_v36 }
 0x506   :  { %v2122_v37 = vpop.eup %2121 }
 0x507   :  { %310 = vrot.lane.b32.xlu0 %v2122_v37, %s2399_s24 }
 0x579   :  { %v311_v38 = vpop.permute.xlu0 %310 }
 0x57a   :  { %v313_v39 = vmul.f32 %v2120_v31, %v311_v38 }
 0x57c   :  { %315 = vrot.lane.b32.xlu1 %v313_v39, %s2400_s25 }
 0x5ee   :  { %v316_v40 = vpop.permute.xlu1 %315 }
 0x5ef   :  { %1886 = vmatmul.mubr.msk.f32.vlgmr.msra.gmra.mrb[2].mxu0 %vm115_vm1, %v316_v40 }
 0x5f0   :  { %2029 = vmatpush3.bf16.msra.mxu0 %v2537_v4  ;;  %1899 = vmatprep.mubr.msk.f32.mxu0 %vm2396_vm0, %v2397_v1 }
 0x5f1   :  { %2033 = vmatprep.subr.bf16.mxu0 %v2395_v0 }
 0x6c2   :  { %v385_v42 = vpop.f32.mrb[2].mxu0 }
 0x6c3   :  { %v389_v43 = vadd.f32 %v385_v42, %v109_v41  ;;  %v1887_v44 = vpop.f32.mrb[3].mxu0 }
 0x6c5   :  { %2123 = vtanh.f32 %v389_v43  ;;  %v1776_v46 = vmul.f32 -1.442695, %v389_v43 }
 0x6c7   :  { %2125 = vpow2.f32 %v1776_v46 }
 0x6cf   :  { %v2124_v45 = vpop.eup %2123 }
 0x6d0   :  { %399 = vrot.lane.b32.xlu0 %v2124_v45, %s2398_s5 }
 0x6d1   :  { %v2126_v47 = vpop.eup %2125 }
 0x6d2   :  { %v393_v48 = vadd.f32 1.0, %v2126_v47  ;;  %v793_v47 = vld [vmem:[#allocation10] sm:$0xff] }
 0x6d4   :  { %2127 = vrcp.f32 %v393_v48  ;;  %v794_v48 = vld [vmem:[#allocation10 + $0x8] sm:$0xff] }
 0x6de   :  { %v2128_v49 = vpop.eup %2127 }
 0x6df   :  { %v397_v52 = vmul.f32 %v2128_v49, %v307_v36 }
 0x742   :  { %v400_v50 = vpop.permute.xlu0 %399 }
 0x743   :  { %v402_v51 = vmul.f32 %v2128_v49, %v400_v50  ;;  %v2591_v50 = vpack.c.bf16 %v794_v48, %v793_v47 }
 0x745   :  { %404 = vrot.lane.b32.xlu1 %v402_v51, %s2399_s24  ;;  %v716_v51 = vld [vmem:[#allocation8 + $0x8] sm:$0xff] }
 0x7b7   :  { %v405_v53 = vpop.permute.xlu1 %404 }
 0x7b8   :  { %v407_v54 = vadd.f32 %v405_v53, %v397_v52  ;;  %v795_v52 = vld [vmem:[#allocation10 + $0x10] sm:$0xff]  ;;  %v796_v53 = vld [vmem:[#allocation10 + $0x18] sm:$0xff] }
 0x7ba   :  { %2129 = vtanh.f32 %v407_v54 }
 0x7c4   :  { %v2130_v55 = vpop.eup %2129 }
 0x7c5   :  { %410 = vrot.lane.b32.xlu0 %v2130_v55, %s2399_s24  ;;  %v2594_v55 = vpack.c.bf16 %v796_v53, %v795_v52 }
 0x837   :  { %v411_v56 = vpop.permute.xlu0 %410 }
 0x838   :  { %v413_v57 = vmul.f32 %v2128_v49, %v411_v56  ;;  %v715_v49 = vld [vmem:[#allocation8] sm:$0xff] }
 0x83a   :  { %415 = vrot.lane.b32.xlu1 %v413_v57, %s2400_s25 }
 0x8ac   :  { %v416_v58 = vpop.permute.xlu1 %415 }
 0x8ad   :  { %1893 = vmatmul.mubr.msk.f32.vlgmr.msra.gmra.mrb[2].mxu1 %vm115_vm1, %v416_v58 }
 0x8ae   :  { %2032 = vmatpush3.bf16.msra.mxu1 %v2537_v4  ;;  %1906 = vmatprep.mubr.msk.f32.mxu1 %vm2396_vm0, %v2397_v1 }
 0x8af   :  { %2036 = vmatprep.subr.bf16.mxu1 %v2395_v0 }
 0x980   :  { %v485_v60 = vpop.f32.mrb[2].mxu1 }
 0x981   :  { %v489_v61 = vadd.f32 %v485_v60, %v110_v59  ;;  %v1894_v62 = vpop.f32.mrb[3].mxu1 }
 0x982   :  { %v714_v62 = vld [vmem:[#allocation5] sm:$0xff] }
 0x983   :  { %2131 = vtanh.f32 %v489_v61  ;;  %v1778_v2 = vmul.f32 -1.442695, %v489_v61 }
 0x985   :  { %2133 = vpow2.f32 %v1778_v2 }
 0x98d   :  { %v2132_v63 = vpop.eup %2131 }
 0x98e   :  { %499 = vrot.lane.b32.xlu0 %v2132_v63, %s2398_s5 }
 0x98f   :  { %v2134_v3 = vpop.eup %2133 }
 0x990   :  { %v493_v5 = vadd.f32 1.0, %v2134_v3 }
 0x992   :  { %2135 = vrcp.f32 %v493_v5 }
 0x99c   :  { %v2136_v6 = vpop.eup %2135 }
 0x99d   :  { %v497_v8 = vmul.f32 %v2136_v6, %v407_v54  ;;  %v2034_v54 = vpack.c.bf16 %v716_v51, %v715_v49 }
 0xa00   :  { %v500_v4 = vpop.permute.xlu0 %499 }
 0xa01   :  { %v502_v7 = vmul.f32 %v2136_v6, %v500_v4 }
 0xa03   :  { %504 = vrot.lane.b32.xlu1 %v502_v7, %s2399_s24 }
 0xa75   :  { %v505_v9 = vpop.permute.xlu1 %504 }
 0xa76   :  { %v507_v10 = vadd.f32 %v505_v9, %v497_v8 }
 0xa78   :  { %2137 = vtanh.f32 %v507_v10 }
 0xa82   :  { %v2138_v11 = vpop.eup %2137 }
 0xa83   :  { %510 = vrot.lane.b32.xlu0 %v2138_v11, %s2399_s24 }
 0xaf5   :  { %v511_v12 = vpop.permute.xlu0 %510 }
 0xaf6   :  { %v513_v13 = vmul.f32 %v2136_v6, %v511_v12 }
 0xaf8   :  { %515 = vrot.lane.b32.xlu1 %v513_v13, %s2400_s25 }
 0xb6a   :  { %v516_v14 = vpop.permute.xlu1 %515 }
 0xb6b   :  { %1900 = vmatmul.mubr.msk.f32.vlgmr.msra.gmra.mrb[4].mxu0 %vm115_vm1, %v516_v14 }
 0xb6c   :  { %1913 = vmatprep.mubr.msk.f32.mxu0 %vm2396_vm0, %v2397_v1  ;;  %2035 = vmatpush3.bf16.msra.mxu0 %v2034_v54 }
 0xb6d   :  { %2042 = vmatprep.subr.bf16.mxu0 %v2395_v0 }
 0xc3e   :  { %v585_v16 = vpop.f32.mrb[4].mxu0 }
 0xc3f   :  { %v589_v17 = vadd.f32 %v585_v16, %v111_v15  ;;  %v1901_v18 = vpop.f32.mrb[5].mxu0 }
 0xc41   :  { %2139 = vtanh.f32 %v589_v17  ;;  %v1780_v20 = vmul.f32 -1.442695, %v589_v17 }
 0xc43   :  { %2141 = vpow2.f32 %v1780_v20 }
 0xc4b   :  { %v2140_v19 = vpop.eup %2139 }
 0xc4c   :  { %599 = vrot.lane.b32.xlu0 %v2140_v19, %s2398_s5 }
 0xc4d   :  { %v2142_v21 = vpop.eup %2141 }
 0xc4e   :  { %v593_v22 = vadd.f32 1.0, %v2142_v21 }
 0xc50   :  { %2143 = vrcp.f32 %v593_v22 }
 0xc5a   :  { %v2144_v23 = vpop.eup %2143 }
 0xc5b   :  { %v597_v26 = vmul.f32 %v2144_v23, %v507_v10 }
 0xcbe   :  { %v600_v24 = vpop.permute.xlu0 %599 }
 0xcbf   :  { %v602_v25 = vmul.f32 %v2144_v23, %v600_v24 }
 0xcc1   :  { %604 = vrot.lane.b32.xlu1 %v602_v25, %s2399_s24 }
 0xd33   :  { %v605_v27 = vpop.permute.xlu1 %604 }
 0xd34   :  { %v607_v28 = vadd.f32 %v605_v27, %v597_v26 }
 0xd36   :  { %2145 = vtanh.f32 %v607_v28 }
 0xd40   :  { %v2146_v29 = vpop.eup %2145 }
 0xd41   :  { %610 = vrot.lane.b32.xlu0 %v2146_v29, %s2399_s24 }
 0xdb3   :  { %v611_v30 = vpop.permute.xlu0 %610 }
 0xdb4   :  { %v613_v31 = vmul.f32 %v2144_v23, %v611_v30 }
 0xdb6   :  { %615 = vrot.lane.b32.xlu1 %v613_v31, %s2400_s25 }
 0xe28   :  { %v616_v32 = vpop.permute.xlu1 %615 }
 0xe29   :  { %1907 = vmatmul.mubr.msk.f32.vlgmr.msra.gmra.mrb[4].mxu1 %vm115_vm1, %v616_v32 }
 0xe2a   :  { %1924 = vmatprep.mubr.msk.f32.mxu1 %vm2396_vm0, %v2397_v1  ;;  %2038 = vmatpush3.bf16.msra.mxu1 %v2591_v50 }
 0xe2b   :  { %2039 = vmatprep.subr.bf16.mxu1 %v2395_v0 }
 0xe2e   :  { %2041 = vmatpush3.bf16.msra.mxu1 %v2594_v55 }
 0xe2f   :  { %2048 = vmatprep.subr.bf16.mxu1 %v2395_v0 }
 0xe31   :  { %1925 = vmatmul.mubr.f32.vlgmr.msra.gmra.mrb[6].mxu1 %v2397_v1 }
 0xe32   :  { %2050 = vmatpush3.bf16.msra.mxu1 %v2591_v50  ;;  %1946 = vmatprep.mubr.msk.f32.mxu1 %vm2396_vm0, %v2397_v1 }
 0xe33   :  { %2051 = vmatprep.subr.bf16.mxu1 %v2395_v0 }
 0xe36   :  { %2053 = vmatpush3.bf16.msra.mxu1 %v2594_v55 }
 0xe37   :  { %2060 = vmatprep.subr.bf16.mxu1 %v2395_v0 }
 0xefc   :  { %v685_v34 = vpop.f32.mrb[4].mxu1 }
 0xefd   :  { %v689_v35 = vadd.f32 %v685_v34, %v112_v33  ;;  %v1908_v36 = vpop.f32.mrb[5].mxu1 }
 0xeff   :  { %2147 = vtanh.f32 %v689_v35  ;;  %v1782_v38 = vmul.f32 -1.442695, %v689_v35 }
 0xf01   :  { %2149 = vpow2.f32 %v1782_v38 }
 0xf04   :  { %v866_v60 = vpop.f32.mrb[6].mxu1 }
 0xf05   :  { %v1926_v61 = vpop.f32.mrb[7].mxu1 }
 0xf09   :  { %v2148_v37 = vpop.eup %2147 }
 0xf0a   :  { %699 = vrot.lane.b32.xlu0 %v2148_v37, %s2398_s5 }
 0xf0b   :  { %v2150_v39 = vpop.eup %2149 }
 0xf0c   :  { %v693_v40 = vadd.f32 1.0, %v2150_v39 }
 0xf0e   :  { %2151 = vrcp.f32 %v693_v40 }
 0xf18   :  { %v2152_v41 = vpop.eup %2151 }
 0xf19   :  { %v697_v44 = vmul.f32 %v2152_v41, %v607_v28 }
 0xf7c   :  { %v700_v42 = vpop.permute.xlu0 %699 }
 0xf7d   :  { %v702_v43 = vmul.f32 %v2152_v41, %v700_v42 }
 0xf7f   :  { %704 = vrot.lane.b32.xlu1 %v702_v43, %s2399_s24 }
 0xff1   :  { %v705_v45 = vpop.permute.xlu1 %704 }
 0xff2   :  { %v707_v46 = vadd.f32 %v705_v45, %v697_v44 }
 0xff4   :  { %2153 = vtanh.f32 %v707_v46 }
 0xffe   :  { %v2154_v56 = vpop.eup %2153 }
 0xfff   :  { %710 = vrot.lane.b32.xlu0 %v2154_v56, %s2399_s24 }
0x1071   :  { %v711_v57 = vpop.permute.xlu0 %710 }
0x1072   :  { %v713_v58 = vmul.f32 %v2152_v41, %v711_v57 }
0x1074   :  { %718 = vrot.lane.b32.xlu1 %v713_v58, %s2400_s25 }
0x10e6   :  { %v719_v59 = vpop.permute.xlu1 %718 }
0x10e7   :  { %1914 = vmatmul.mubr.msk.f32.vlgmr.msra.gmra.mrb[6].mxu0 %vm115_vm1, %v719_v59 }
0x10e8   :  { %2044 = vmatpush3.bf16.msra.mxu0 %v2591_v50  ;;  %1935 = vmatprep.mubr.msk.f32.mxu0 %vm2396_vm0, %v2397_v1 }
0x10e9   :  { %2045 = vmatprep.subr.bf16.mxu0 %v2395_v0 }
0x10ec   :  { %2047 = vmatpush3.bf16.msra.mxu0 %v2594_v55 }
0x10ed   :  { %2054 = vmatprep.subr.bf16.mxu0 %v2395_v0 }
0x11ba   :  { %v788_v63 = vpop.f32.mrb[6].mxu0 }
0x11bb   :  { %v2616_v2 = vadd.f32 %v788_v63, %v714_v62  ;;  %v1915_v3 = vpop.f32.mrb[7].mxu0 }
0x11bd   :  { %v870_v5 = vadd.f32 %v866_v60, %v2616_v2 }
0x11bf   :  { %2155 = vtanh.f32 %v870_v5  ;;  %v1784_v4 = vmul.f32 -1.442695, %v870_v5 }
0x11c1   :  { %2157 = vpow2.f32 %v1784_v4 }
0x11c9   :  { %v2156_v6 = vpop.eup %2155 }
0x11ca   :  { %880 = vrot.lane.b32.xlu0 %v2156_v6, %s2401_s26 }
0x11cb   :  { %v2158_v7 = vpop.eup %2157 }
0x11cc   :  { %v874_v8 = vadd.f32 1.0, %v2158_v7 }
0x11ce   :  { %2159 = vrcp.f32 %v874_v8 }
0x11d8   :  { %v2160_v9 = vpop.eup %2159 }
0x11d9   :  { %v878_v12 = vmul.f32 0.0, %v2160_v9 }
0x123c   :  { %v881_v10 = vpop.permute.xlu0 %880 }
0x123d   :  { %v883_v11 = vmul.f32 %v2160_v9, %v881_v10 }
0x123f   :  { %885 = vrot.lane.b32.xlu1 %v883_v11, %s2401_s26 }
0x12b1   :  { %v886_v13 = vpop.permute.xlu1 %885 }
0x12b2   :  { %v888_v14 = vadd.f32 %v886_v13, %v878_v12 }
0x12b4   :  { %2161 = vtanh.f32 %v888_v14  ;;  %v982_v30 = vrot.slane %v888_v14, 7 }
0x12be   :  { %v2162_v15 = vpop.eup %2161 }
0x12bf   :  { %891 = vrot.lane.b32.xlu0 %v2162_v15, %s2401_s26 }
0x1331   :  { %v892_v16 = vpop.permute.xlu0 %891 }
0x1332   :  { %v2622_v17 = vmul.f32 %v2160_v9, %v892_v16 }
0x1334   :  { %896 = vrot.lane.b32.xlu1 %v2622_v17, %s2402_s0 }
0x13a6   :  { %v897_v18 = vpop.permute.xlu1 %896 }
0x13a7   :  { %1936 = vmatmul.mubr.msk.f32.vlgmr.msra.gmra.mrb[8].mxu0 %vm797_vm2, %v897_v18 }
0x13a8   :  { %2056 = vmatpush3.bf16.msra.mxu0 %v2591_v50  ;;  %1957 = vmatprep.mubr.msk.f32.mxu0 %vm2396_vm0, %v2397_v1 }
0x13a9   :  { %2057 = vmatprep.subr.bf16.mxu0 %v2395_v0 }
0x13ac   :  { %2059 = vmatpush3.bf16.msra.mxu0 %v2594_v55 }
0x13ad   :  { %2066 = vmatprep.subr.bf16.mxu0 %v2395_v0 }
0x147a   :  { %v966_v19 = vpop.f32.mrb[8].mxu0 }
0x147b   :  { %v971_v20 = vrot.slane %v966_v19, 7  ;;  %v1937_v21 = vpop.f32.mrb[9].mxu0 }
0x147d   :  { %v973_v22 = vadd.f32 %v971_v20, %v2616_v2 }
0x147f   :  { %2163 = vtanh.f32 %v973_v22  ;;  %v1786_v24 = vmul.f32 -1.442695, %v973_v22 }
0x1481   :  { %2165 = vpow2.f32 %v1786_v24 }
0x1489   :  { %v2164_v23 = vpop.eup %2163 }
0x148a   :  { %986 = vrot.lane.b32.xlu0 %v2164_v23, %s2401_s26 }
0x148b   :  { %v2166_v25 = vpop.eup %2165 }
0x148c   :  { %v977_v26 = vadd.f32 1.0, %v2166_v25 }
0x148e   :  { %2167 = vrcp.f32 %v977_v26 }
0x1498   :  { %v2168_v27 = vpop.eup %2167 }
0x1499   :  { %v984_v31 = vmul.f32 %v2168_v27, %v982_v30 }
0x14fc   :  { %v987_v28 = vpop.permute.xlu0 %986 }
0x14fd   :  { %v989_v29 = vmul.f32 %v2168_v27, %v987_v28 }
0x14ff   :  { %991 = vrot.lane.b32.xlu1 %v989_v29, %s2401_s26 }
0x1571   :  { %v992_v32 = vpop.permute.xlu1 %991 }
0x1572   :  { %v994_v33 = vadd.f32 %v992_v32, %v984_v31 }
0x1574   :  { %2169 = vtanh.f32 %v994_v33  ;;  %v1089_v51 = vrot.slane %v994_v33, 7 }
0x157e   :  { %v2170_v34 = vpop.eup %2169 }
0x157f   :  { %997 = vrot.lane.b32.xlu0 %v2170_v34, %s2401_s26 }
0x15f1   :  { %v998_v35 = vpop.permute.xlu0 %997 }
0x15f2   :  { %v1000_v36 = vmul.f32 %v2168_v27, %v998_v35 }
0x15f4   :  { %v1002_v37 = vrot.slane %v1000_v36, 1  ;;  %v1644_v59 = vsel %vm1643_vm3, %v2622_v17, %v1000_v36 }
0x15f6   :  { %1003 = vrot.lane.b32.xlu1 %v1002_v37, %s2402_s0 }
0x1668   :  { %v1004_v38 = vpop.permute.xlu1 %1003 }
0x1669   :  { %1947 = vmatmul.mubr.msk.f32.vlgmr.msra.gmra.mrb[8].mxu1 %vm797_vm2, %v1004_v38 }
0x166a   :  { %2062 = vmatpush3.bf16.msra.mxu1 %v2591_v50  ;;  %1968 = vmatprep.mubr.msk.f32.mxu1 %vm2396_vm0, %v2397_v1 }
0x166b   :  { %2063 = vmatprep.subr.bf16.mxu1 %v2395_v0 }
0x166e   :  { %2065 = vmatpush3.bf16.msra.mxu1 %v2594_v55 }
0x166f   :  { %2072 = vmatprep.subr.bf16.mxu1 %v2395_v0 }
0x173c   :  { %v1073_v39 = vpop.f32.mrb[8].mxu1 }
0x173d   :  { %v1078_v40 = vrot.slane %v1073_v39, 6  ;;  %v1948_v41 = vpop.f32.mrb[9].mxu1 }
0x173f   :  { %v1080_v42 = vadd.f32 %v1078_v40, %v2616_v2 }
0x1741   :  { %2171 = vtanh.f32 %v1080_v42  ;;  %v1788_v44 = vmul.f32 -1.442695, %v1080_v42 }
0x1743   :  { %2173 = vpow2.f32 %v1788_v44 }
0x174b   :  { %v2172_v43 = vpop.eup %2171 }
0x174c   :  { %1093 = vrot.lane.b32.xlu0 %v2172_v43, %s2401_s26 }
0x174d   :  { %v2174_v45 = vpop.eup %2173 }
0x174e   :  { %v1084_v46 = vadd.f32 1.0, %v2174_v45 }
0x1750   :  { %2175 = vrcp.f32 %v1084_v46 }
0x175a   :  { %v2176_v47 = vpop.eup %2175 }
0x175b   :  { %v1091_v52 = vmul.f32 %v2176_v47, %v1089_v51 }
0x17be   :  { %v1094_v48 = vpop.permute.xlu0 %1093 }
0x17bf   :  { %v1096_v49 = vmul.f32 %v2176_v47, %v1094_v48 }
0x17c1   :  { %1098 = vrot.lane.b32.xlu1 %v1096_v49, %s2401_s26 }
0x1833   :  { %v1099_v53 = vpop.permute.xlu1 %1098 }
0x1834   :  { %v1101_v54 = vadd.f32 %v1099_v53, %v1091_v52 }
0x1836   :  { %2177 = vtanh.f32 %v1101_v54  ;;  %v1196_v13 = vrot.slane %v1101_v54, 7 }
0x1840   :  { %v2178_v56 = vpop.eup %2177 }
0x1841   :  { %1104 = vrot.lane.b32.xlu0 %v2178_v56, %s2401_s26 }
0x18b3   :  { %v1105_v57 = vpop.permute.xlu0 %1104 }
0x18b4   :  { %v1107_v58 = vmul.f32 %v2176_v47, %v1105_v57 }
0x18b6   :  { %v1109_v60 = vrot.slane %v1107_v58, 2  ;;  %v1646_v61 = vsel %vm1645_vm4, %v1644_v59, %v1107_v58 }
0x18b8   :  { %1110 = vrot.lane.b32.xlu1 %v1109_v60, %s2402_s0 }
0x192a   :  { %v1111_v62 = vpop.permute.xlu1 %1110 }
0x192b   :  { %1958 = vmatmul.mubr.msk.f32.vlgmr.msra.gmra.mrb[10].mxu0 %vm797_vm2, %v1111_v62 }
0x192c   :  { %2068 = vmatpush3.bf16.msra.mxu0 %v2591_v50  ;;  %1979 = vmatprep.mubr.msk.f32.mxu0 %vm2396_vm0, %v2397_v1 }
0x192d   :  { %2069 = vmatprep.subr.bf16.mxu0 %v2395_v0 }
0x1930   :  { %2071 = vmatpush3.bf16.msra.mxu0 %v2594_v55 }
0x1931   :  { %2078 = vmatprep.subr.bf16.mxu0 %v2395_v0 }
0x19fe   :  { %v1180_v63 = vpop.f32.mrb[10].mxu0 }
0x19ff   :  { %v1185_v3 = vrot.slane %v1180_v63, 5  ;;  %v1959_v5 = vpop.f32.mrb[11].mxu0 }
0x1a01   :  { %v1187_v6 = vadd.f32 %v1185_v3, %v2616_v2 }
0x1a03   :  { %2179 = vtanh.f32 %v1187_v6  ;;  %v1790_v7 = vmul.f32 -1.442695, %v1187_v6 }
0x1a05   :  { %2181 = vpow2.f32 %v1790_v7 }
0x1a0d   :  { %v2180_v4 = vpop.eup %2179 }
0x1a0e   :  { %1200 = vrot.lane.b32.xlu0 %v2180_v4, %s2401_s26 }
0x1a0f   :  { %v2182_v8 = vpop.eup %2181 }
0x1a10   :  { %v1191_v9 = vadd.f32 1.0, %v2182_v8 }
0x1a12   :  { %2183 = vrcp.f32 %v1191_v9 }
0x1a1c   :  { %v2184_v10 = vpop.eup %2183 }
0x1a1d   :  { %v1198_v14 = vmul.f32 %v2184_v10, %v1196_v13 }
0x1a80   :  { %v1201_v11 = vpop.permute.xlu0 %1200 }
0x1a81   :  { %v1203_v12 = vmul.f32 %v2184_v10, %v1201_v11 }
0x1a83   :  { %1205 = vrot.lane.b32.xlu1 %v1203_v12, %s2401_s26 }
0x1af5   :  { %v1206_v15 = vpop.permute.xlu1 %1205 }
0x1af6   :  { %v1208_v16 = vadd.f32 %v1206_v15, %v1198_v14 }
0x1af8   :  { %2185 = vtanh.f32 %v1208_v16  ;;  %v1303_v34 = vrot.slane %v1208_v16, 7 }
0x1b02   :  { %v2186_v17 = vpop.eup %2185 }
0x1b03   :  { %1211 = vrot.lane.b32.xlu0 %v2186_v17, %s2401_s26 }
0x1b75   :  { %v1212_v18 = vpop.permute.xlu0 %1211 }
0x1b76   :  { %v1214_v19 = vmul.f32 %v2184_v10, %v1212_v18 }
0x1b78   :  { %v1216_v20 = vrot.slane %v1214_v19, 3  ;;  %v1648_v21 = vsel %vm1647_vm5, %v1646_v61, %v1214_v19 }
0x1b7a   :  { %1217 = vrot.lane.b32.xlu1 %v1216_v20, %s2402_s0 }
0x1bec   :  { %v1218_v22 = vpop.permute.xlu1 %1217 }
0x1bed   :  { %1969 = vmatmul.mubr.msk.f32.vlgmr.msra.gmra.mrb[10].mxu1 %vm797_vm2, %v1218_v22 }
0x1bee   :  { %2074 = vmatpush3.bf16.msra.mxu1 %v2591_v50  ;;  %1990 = vmatprep.mubr.msk.f32.mxu1 %vm2396_vm0, %v2397_v1 }
0x1bef   :  { %2075 = vmatprep.subr.bf16.mxu1 %v2395_v0 }
0x1bf2   :  { %2077 = vmatpush3.bf16.msra.mxu1 %v2594_v55 }
0x1bf3   :  { %2084 = vmatprep.subr.bf16.mxu1 %v2395_v0 }
0x1cc0   :  { %v1287_v23 = vpop.f32.mrb[10].mxu1 }
0x1cc1   :  { %v1292_v24 = vrot.slane %v1287_v23, 4  ;;  %v1970_v25 = vpop.f32.mrb[11].mxu1 }
0x1cc3   :  { %v1294_v26 = vadd.f32 %v1292_v24, %v2616_v2 }
0x1cc5   :  { %2187 = vtanh.f32 %v1294_v26  ;;  %v1792_v28 = vmul.f32 -1.442695, %v1294_v26 }
0x1cc7   :  { %2189 = vpow2.f32 %v1792_v28 }
0x1ccf   :  { %v2188_v27 = vpop.eup %2187 }
0x1cd0   :  { %1307 = vrot.lane.b32.xlu0 %v2188_v27, %s2401_s26 }
0x1cd1   :  { %v2190_v29 = vpop.eup %2189 }
0x1cd2   :  { %v1298_v30 = vadd.f32 1.0, %v2190_v29 }
0x1cd4   :  { %2191 = vrcp.f32 %v1298_v30 }
0x1cde   :  { %v2192_v31 = vpop.eup %2191 }
0x1cdf   :  { %v1305_v35 = vmul.f32 %v2192_v31, %v1303_v34 }
0x1d42   :  { %v1308_v32 = vpop.permute.xlu0 %1307 }
0x1d43   :  { %v1310_v33 = vmul.f32 %v2192_v31, %v1308_v32 }
0x1d45   :  { %1312 = vrot.lane.b32.xlu1 %v1310_v33, %s2401_s26 }
0x1db7   :  { %v1313_v36 = vpop.permute.xlu1 %1312 }
0x1db8   :  { %v1315_v37 = vadd.f32 %v1313_v36, %v1305_v35 }
0x1dba   :  { %2193 = vtanh.f32 %v1315_v37 }
0x1dc4   :  { %v2194_v38 = vpop.eup %2193 }
0x1dc5   :  { %1318 = vrot.lane.b32.xlu0 %v2194_v38, %s2401_s26 }
0x1e37   :  { %v1319_v39 = vpop.permute.xlu0 %1318 }
0x1e38   :  { %v1321_v40 = vmul.f32 %v2192_v31, %v1319_v39  ;;  %v1658_v39 = vld [vmem:[#allocation11 + $0x8] sm:$0xff] }
0x1e3a   :  { %v1323_v41 = vrot.slane %v1321_v40, 4  ;;  %v1650_v42 = vsel %vm1649_vm6, %v1648_v21, %v1321_v40  ;;  %v1659_v40 = vld [vmem:[#allocation11 + $0x10] sm:$0xff] }
0x1e3c   :  { %1324 = vrot.lane.b32.xlu1 %v1323_v41, %s2402_s0 }
0x1eae   :  { %v1325_v43 = vpop.permute.xlu1 %1324 }
0x1eaf   :  { %1980 = vmatmul.mubr.msk.f32.vlgmr.msra.gmra.mrb[12].mxu0 %vm797_vm2, %v1325_v43 }
0x1eb0   :  { %2080 = vmatpush3.bf16.msra.mxu0 %v2591_v50  ;;  %2001 = vmatprep.mubr.msk.f32.mxu0 %vm2396_vm0, %v2397_v1 }
0x1eb1   :  { %2081 = vmatprep.subr.bf16.mxu0 %v2395_v0 }
0x1eb4   :  { %2083 = vmatpush3.bf16.msra.mxu0 %v2594_v55  ;;  %v1410_v55 = vrot.slane %v1315_v37, 7 }
0x1f82   :  { %v1394_v44 = vpop.f32.mrb[12].mxu0 }
0x1f83   :  { %v1399_v45 = vrot.slane %v1394_v44, 3  ;;  %v1981_v46 = vpop.f32.mrb[13].mxu0 }
0x1f85   :  { %v1401_v47 = vadd.f32 %v1399_v45, %v2616_v2 }
0x1f87   :  { %2195 = vtanh.f32 %v1401_v47  ;;  %v1794_v49 = vmul.f32 -1.442695, %v1401_v47 }
0x1f89   :  { %2197 = vpow2.f32 %v1794_v49  ;;  %v1799_v49 = vld [vmem:[%s2723_s6] ss:$0 sm:$0xff]  ;;  %s2355_s6 = scalar_lea.vmem %s1761_s29, 128 }
0x1f8a   :  { %p2356_p6 = scmp.ne.s32.totalorder %s1761_s29, %s2355_s6  ;;  %p2361_p8 = scmp.lt.s32.totalorder %s2355_s6, %s2355_s6 }
0x1f8c   :  { %p2362_p9 = por %p2361_p8, %p2360_p7 }
0x1f8e   :  { %p2363_p10 = pnand %p2362_p9, %p2356_p6 }
0x1f91   :  { %v2196_v48 = vpop.eup %2195 }
0x1f92   :  { %1414 = vrot.lane.b32.xlu0 %v2196_v48, %s2401_s26 }
0x1f93   :  { %v2198_v51 = vpop.eup %2197 }
0x1f94   :  { %v1405_v50 = vadd.f32 1.0, %v2198_v51 }
0x1f96   :  { %2199 = vrcp.f32 %v1405_v50 }
0x1fa0   :  { %v2200_v52 = vpop.eup %2199 }
0x1fa1   :  { %v1412_v56 = vmul.f32 %v2200_v52, %v1410_v55 }
0x2004   :  { %v1415_v53 = vpop.permute.xlu0 %1414 }
0x2005   :  { %v1417_v54 = vmul.f32 %v2200_v52, %v1415_v53 }
0x2007   :  { %1419 = vrot.lane.b32.xlu1 %v1417_v54, %s2401_s26 }
0x2079   :  { %v1420_v57 = vpop.permute.xlu1 %1419 }
0x207a   :  { %v1422_v58 = vadd.f32 %v1420_v57, %v1412_v56 }
0x207c   :  { %2201 = vtanh.f32 %v1422_v58 }
0x2086   :  { %v2202_v59 = vpop.eup %2201 }
0x2087   :  { %1425 = vrot.lane.b32.xlu0 %v2202_v59, %s2401_s26 }
0x20f9   :  { %v1426_v60 = vpop.permute.xlu0 %1425 }
0x20fa   :  { %v1428_v61 = vmul.f32 %v2200_v52, %v1426_v60 }
0x20fc   :  { %v1430_v62 = vrot.slane %v1428_v61, 5  ;;  %v1652_v63 = vsel %vm1651_vm7, %v1650_v42, %v1428_v61  ;;  %v1660_v42 = vld [vmem:[#allocation11 + $0x18] sm:$0xff] }
0x20fd   :  { %v2088_v43 = vpack.c.bf16 %v1660_v42, %v1659_v40 }
0x20fe   :  { %1431 = vrot.lane.b32.xlu1 %v1430_v62, %s2402_s0 }
0x2170   :  { %v1432_v3 = vpop.permute.xlu1 %1431 }
0x2171   :  { %1991 = vmatmul.mubr.msk.f32.vlgmr.msra.gmra.mrb[12].mxu1 %vm797_vm2, %v1432_v3 }
0x2172   :  { %2012 = vmatprep.mubr.msk.f32.mxu1 %vm2396_vm0, %v2397_v1  ;;  %v1517_v1 = vrot.slane %v1422_v58, 7 }
0x2244   :  { %v1501_v5 = vpop.f32.mrb[12].mxu1 }
0x2245   :  { %v1506_v6 = vrot.slane %v1501_v5, 2  ;;  %v1992_v4 = vpop.f32.mrb[13].mxu1 }
0x2247   :  { %v1508_v7 = vadd.f32 %v1506_v6, %v2616_v2 }
0x2249   :  { %2203 = vtanh.f32 %v1508_v7  ;;  %v1796_v9 = vmul.f32 -1.442695, %v1508_v7 }
0x224b   :  { %2205 = vpow2.f32 %v1796_v9 }
0x2253   :  { %v2204_v8 = vpop.eup %2203 }
0x2254   :  { %1521 = vrot.lane.b32.xlu0 %v2204_v8, %s2401_s26 }
0x2255   :  { %v2206_v10 = vpop.eup %2205 }
0x2256   :  { %v1512_v11 = vadd.f32 1.0, %v2206_v10 }
0x2258   :  { %2207 = vrcp.f32 %v1512_v11 }
0x2262   :  { %v2208_v12 = vpop.eup %2207 }
0x2263   :  { %v1519_v15 = vmul.f32 %v2208_v12, %v1517_v1 }
0x22c6   :  { %v1522_v13 = vpop.permute.xlu0 %1521 }
0x22c7   :  { %v1524_v14 = vmul.f32 %v2208_v12, %v1522_v13 }
0x22c9   :  { %1526 = vrot.lane.b32.xlu1 %v1524_v14, %s2401_s26 }
0x233b   :  { %v1527_v16 = vpop.permute.xlu1 %1526 }
0x233c   :  { %v1529_v17 = vadd.f32 %v1527_v16, %v1519_v15 }
0x233e   :  { %2209 = vtanh.f32 %v1529_v17  ;;  %v1624_v35 = vrot.slane %v1529_v17, 7 }
0x2348   :  { %v2210_v18 = vpop.eup %2209 }
0x2349   :  { %1532 = vrot.lane.b32.xlu0 %v2210_v18, %s2401_s26 }
0x23bb   :  { %v1533_v19 = vpop.permute.xlu0 %1532 }
0x23bc   :  { %v1535_v20 = vmul.f32 %v2208_v12, %v1533_v19 }
0x23be   :  { %v1537_v21 = vrot.slane %v1535_v20, 6  ;;  %v1654_v22 = vsel %vm1653_vm8, %v1652_v63, %v1535_v20 }
0x23c0   :  { %1538 = vrot.lane.b32.xlu1 %v1537_v21, %s2402_s0 }
0x2432   :  { %v1539_v23 = vpop.permute.xlu1 %1538 }
0x2433   :  { %2002 = vmatmul.mubr.msk.f32.vlgmr.msra.gmra.mrb[14].mxu0 %vm797_vm2, %v1539_v23 }
0x2506   :  { %v1608_v24 = vpop.f32.mrb[14].mxu0 }
0x2507   :  { %v1613_v25 = vrot.slane %v1608_v24, 1  ;;  %v2003_v26 = vpop.f32.mrb[15].mxu0 }
0x2509   :  { %v1615_v27 = vadd.f32 %v1613_v25, %v2616_v2  ;;  %v1657_v2 = vld [vmem:[#allocation11] sm:$0xff] }
0x250a   :  { %v2085_v41 = vpack.c.bf16 %v1658_v39, %v1657_v2 }
0x250b   :  { %2211 = vtanh.f32 %v1615_v27  ;;  %v1798_v29 = vmul.f32 -1.442695, %v1615_v27 }
0x250c   :  { %2086 = vmatpush3.bf16.msra.mxu1 %v2085_v41 }
0x250d   :  { %2213 = vpow2.f32 %v1798_v29  ;;  %2087 = vmatprep.subr.bf16.mxu1 %v2395_v0 }
0x2510   :  { %2089 = vmatpush3.bf16.msra.mxu1 %v2088_v43 }
0x2515   :  { %v2212_v28 = vpop.eup %2211 }
0x2516   :  { %1628 = vrot.lane.b32.xlu0 %v2212_v28, %s2401_s26 }
0x2517   :  { %v2214_v30 = vpop.eup %2213 }
0x2518   :  { %v1619_v31 = vadd.f32 1.0, %v2214_v30 }
0x251a   :  { %2215 = vrcp.f32 %v1619_v31 }
0x2524   :  { %v2216_v32 = vpop.eup %2215 }
0x2525   :  { %v1626_v36 = vmul.f32 %v2216_v32, %v1624_v35 }
0x2588   :  { %v1629_v33 = vpop.permute.xlu0 %1628 }
0x2589   :  { %v1631_v34 = vmul.f32 %v2216_v32, %v1629_v33 }
0x258b   :  { %1633 = vrot.lane.b32.xlu1 %v1631_v34, %s2401_s26 }
0x25fd   :  { %v1634_v37 = vpop.permute.xlu1 %1633 }
0x25fe   :  { %v1636_v38 = vadd.f32 %v1634_v37, %v1626_v36 }
0x2600   :  { %2217 = vtanh.f32 %v1636_v38 }
0x260a   :  { %v2218_v44 = vpop.eup %2217 }
0x260b   :  { %1639 = vrot.lane.b32.xlu0 %v2218_v44, %s2401_s26 }
0x267d   :  { %v1640_v45 = vpop.permute.xlu0 %1639 }
0x267e   :  { %v1642_v46 = vmul.f32 %v2216_v32, %v1640_v45 }
0x2680   :  { %v1656_v47 = vsel %vm1655_vm9, %v1654_v22, %v1642_v46 }
0x2681   :  { %1669 = vrot.lane.b32.xlu1 %v1656_v47, %s2402_s0 }
0x26f3   :  { %v1670_v48 = vpop.permute.xlu1 %1669 }
0x26f4   :  { %2013 = vmatmul.mubr.msk.f32.vlgmr.msra.gmra.mrb[14].mxu1 %vm797_vm2, %v1670_v48 }
0x27c7   :  { %v1739_v51 = vpop.f32.mrb[14].mxu1 }
0x27c8   :  { %v1740_v50 = vadd.f32 %v1799_v49, %v1739_v51  ;;  %v2014_v0 = vpop.f32.mrb[15].mxu1 }
0x27ca   :  { %1743 = vmax.xlane.f32.xlu0 %v1740_v50 }
0x2857   :  { %v1744_v52 = vpop.xlane.xlu0 %1743 }
0x2858   :  { %v1745_v53 = vsub.f32 %v1740_v50, %v1744_v52 }
0x285a   :  { %v1746_v54 = vmul.f32 1.442695, %v1745_v53 }
0x285c   :  { %2219 = vpow2.f32 %v1746_v54 }
0x2866   :  { %v2220_v55 = vpop.eup %2219 }
0x2867   :  { %1748 = vadd.xlane.f32.xlu1 %v2220_v55 }
0x28f4   :  { %v1749_v56 = vpop.xlane.xlu1 %1748 }
0x28f5   :  { %2221 = vlog2.f32 %v1749_v56 }
0x28ff   :  { %v2222_v57 = vpop.eup %2221 }
0x2900   :  { %v1751_v58 = vmul.f32 0.6931472, %v2222_v57 }
0x2902   :  { %v1752_v59 = vsub.f32 %v1745_v53, %v1751_v58 }
0x2904   :  { %1753 = vst [vmem:[#allocation13] sm:$0xff] %v1752_v59 }
0x2905   :  { %2366 = shalt.err (!%p2363_p10)
}
0x2906   :  { %s2367_s9 = scalar_lea.hbm %s2724_s7, 128 }
0x2907   :  { %p2368_p11 = scmp.ne.s32.totalorder %s2724_s7, %s2367_s9  ;;  %p2371_p12 = scmp.lt.u32.totalorder %s2367_s9, %s2724_s7 }
0x2909   :  { %p2373_p13 = pnand %p2371_p12, %p2368_p11 }
0x290b   :  { %2376 = shalt.err (!%p2373_p13)
}
0x290c   :  { %1763 = dma.vmem_to_hbm [thread:$0]  %s1761_s29, 128, %s2724_s7, [#allocation4]  }
0x290d   :  { %2385 = dma.done.wait [#allocation4], 128  }
0x290e   :  { %2386 = vsyncadd [#allocation4], 4294967168 }
0x290f   :  { %1767 = vsyncpa [#allocation3], 1 }
0x2910   :  { %1768 = vsyncpa [#allocation6], 1 }
0x2911   :  { %1769 = vsyncpa [#allocation9], 1 }
0x2912   :  { %1770 = vsyncpa [#allocation12], 1 }
0x2913   :  { %1771 = vsyncpa [#allocation4], 1 }

</bundles_post_ra>
